<compile_context>
chip_gen: v7x
topology: tpu7x:2x2x1
jax: 0.10.0
libtpu: 0.0.40
codegen_flags: <defaults>
</compile_context>

<pallas_src>
import math
from functools import partial

import numpy as np
import jax
import jax.numpy as jnp
from jax.experimental import pallas as pl
from jax.experimental.pallas import tpu as pltpu

EPS = 1e-5
_VMEM_LIMIT = 32 * 1024 * 1024   # safe on all gens (v7x physical VMEM = 64 MiB)


# ----------------------------- Pallas kernels ------------------------------

def _bn_stats_kernel(x_ref, sum_ref, sq_ref):
    """Column sum / sum-of-squares of (N, H/g, g*W*C), accumulated into a
    resident (1, g*W*C) output across the (arbitrary) image grid axis."""
    @pl.when(pl.program_id(0) == 0)
    def _():
        sum_ref[...] = jnp.zeros_like(sum_ref)
        sq_ref[...] = jnp.zeros_like(sq_ref)

    x = x_ref[0]                                        # (H/g, g*W*C)
    sum_ref[...] += jnp.sum(x, axis=0, keepdims=True)   # (1, g*W*C)
    sq_ref[...] += jnp.sum(x * x, axis=0, keepdims=True)


def _make_fused_conv_kernel(kprime, pad_g, with_residual, emit_stats):
    """BN-normalize + ReLU + implicit-GEMM 'same' conv + bias
    (+ residual add, + output stats) for one image block (1, H/g, g*W*C)."""

    def kernel(*refs):
        idx = 0
        x_ref = refs[idx]; idx += 1
        scale_ref = refs[idx]; idx += 1
        shift_ref = refs[idx]; idx += 1
        w_ref = refs[idx]; idx += 1          # (k'*g*W*C, g*W*C) bf16
        b_ref = refs[idx]; idx += 1
        res_ref = None
        if with_residual:
            res_ref = refs[idx]; idx += 1
        o_ref = refs[idx]; idx += 1
        osum_ref = osq_ref = None
        if emit_stats:
            osum_ref = refs[idx]; idx += 1
            osq_ref = refs[idx]; idx += 1
        halo_ref = refs[idx]                 # VMEM (H/g + 2*pad_g, g*W*C) f32

        hr = x_ref.shape[1]
        gwc = x_ref.shape[2]

        # BatchNorm (batch statistics pre-folded into scale/shift) + ReLU, f32.
        a = jnp.maximum(x_ref[0] * scale_ref[...] + shift_ref[...], 0.0)

        # Halo scratch supplies the conv's H-direction zero padding.  Only the
        # pad border rows are zeroed each step (interior fully overwritten);
        # a program_id==0 gate would be wrong under 'parallel' core splitting.
        if pad_g > 0:
            zeros = jnp.zeros((pad_g, gwc), jnp.float32)
            halo_ref[0:pad_g, :] = zeros
            halo_ref[pad_g + hr:, :] = zeros
        halo_ref[pad_g:pad_g + hr, :] = a

        # Implicit GEMM: gather the k' group-row taps into one operand and do a
        # single MXU matmul; W-taps / H-taps / channel mixing all live in the
        # banded weight.  Operands bf16, accumulate f32.
        taps = jnp.concatenate(
            [halo_ref[t:t + hr, :] for t in range(kprime)], axis=1)
        acc = jnp.dot(taps.astype(jnp.bfloat16), w_ref[...],
                      preferred_element_type=jnp.float32)

        y = acc + b_ref[...]
        if with_residual:
            y = y + res_ref[0]
        o_ref[0] = y.astype(o_ref.dtype)

        if emit_stats:
            # Column stats of this image's conv output (feeds the next BN),
            # computed from the f32 accumulator before any cast.
            osum_ref[0] = jnp.sum(y, axis=0, keepdims=True)
            osq_ref[0] = jnp.sum(y * y, axis=0, keepdims=True)

    return kernel


# ------------------------------ wrappers ------------------------------------

def bn_stats(x3):
    """x3: (N, H/g, g*W*C) -> (1, g*W*C) column sum and sum-of-squares."""
    n, hr, gwc = x3.shape
    return pl.pallas_call(
        _bn_stats_kernel,
        out_shape=(jax.ShapeDtypeStruct((1, gwc), jnp.float32),
                   jax.ShapeDtypeStruct((1, gwc), jnp.float32)),
        grid=(n,),
        in_specs=[pl.BlockSpec((1, hr, gwc), lambda i: (i, 0, 0))],
        out_specs=(pl.BlockSpec((1, gwc), lambda i: (0, 0)),
                   pl.BlockSpec((1, gwc), lambda i: (0, 0))),
        compiler_params=pltpu.CompilerParams(
            dimension_semantics=("arbitrary",),      # resident accumulator
            vmem_limit_bytes=_VMEM_LIMIT),
    )(x3)


def fused_bn_relu_conv(x3, scale, shift, wmats, bias, residual=None,
                       emit_stats=False):
    """Fused BN+ReLU+conv(+bias)(+residual)(+output-stats) over (N, H/g, g*W*C)."""
    n, hr, gwc = x3.shape
    kprime = wmats.shape[0]
    pad_g = (kprime - 1) // 2
    w_flat = wmats.reshape(kprime * gwc, gwc)          # bf16
    kernel = _make_fused_conv_kernel(kprime, pad_g, residual is not None,
                                     emit_stats)

    in_specs = [pl.BlockSpec((1, hr, gwc), lambda i: (i, 0, 0)),
                pl.BlockSpec((1, gwc), lambda i: (0, 0)),
                pl.BlockSpec((1, gwc), lambda i: (0, 0)),
                # Grid-invariant weights: the auto-pipeline skips re-DMA for an
                # unchanged block index.  TODO(synk): single-buffer it
                # (pl.Buffered(1) / per-core manual DMA) and W-tile the band
                # once k'*(g*W*C)^2 approaches the VMEM budget (v7x 64 MiB).
                pl.BlockSpec((kprime * gwc, gwc), lambda i: (0, 0)),
                pl.BlockSpec((1, gwc), lambda i: (0, 0))]
    args = [x3, scale, shift, w_flat, bias]
    if residual is not None:
        in_specs.append(pl.BlockSpec((1, hr, gwc), lambda i: (i, 0, 0)))
        args.append(residual)

    if emit_stats:
        out_shape = (jax.ShapeDtypeStruct((n, hr, gwc), jnp.float32),
                     jax.ShapeDtypeStruct((n, 1, gwc), jnp.float32),
                     jax.ShapeDtypeStruct((n, 1, gwc), jnp.float32))
        out_specs = (pl.BlockSpec((1, hr, gwc), lambda i: (i, 0, 0)),
                     pl.BlockSpec((1, 1, gwc), lambda i: (i, 0, 0)),
                     pl.BlockSpec((1, 1, gwc), lambda i: (i, 0, 0)))
    else:
        out_shape = jax.ShapeDtypeStruct((n, hr, gwc), jnp.float32)
        out_specs = pl.BlockSpec((1, hr, gwc), lambda i: (i, 0, 0))

    return pl.pallas_call(
        kernel,
        out_shape=out_shape,
        grid=(n,),
        in_specs=in_specs,
        out_specs=out_specs,
        scratch_shapes=[pltpu.VMEM((hr + 2 * pad_g, gwc), jnp.float32)],
        compiler_params=pltpu.CompilerParams(
            dimension_semantics=("parallel",),        # shards images across TCs
            vmem_limit_bytes=_VMEM_LIMIT),
    )(*args)


# ----------------------- weight / stats glue (tiny, XLA) ---------------------

def _banded_conv_weights(w_oihw, width, g, pad):
    """PyTorch conv weight (O, I, kh, kw) -> (k', g*W*I, g*W*O) banded bf16 mats.

    Row-grouped implicit GEMM: with the image viewed as (H/g, g*W*C), output
    group-row j needs input group-rows j-pad_g .. j+pad_g (k' = 2*pad_g+1 taps).
    B[t][(r_in*W + w_in)*I + ci, (r_out*W + w_out)*O + co] = weight[co, ci, kh, kw]
    where dh = kh-pad, dw = kw-pad, r_in/group-offset come from r_out+dh, and
    w_in = w_out+dw (W-direction zero padding is implicit: out-of-range columns
    simply have no entries)."""
    c_out, c_in, kh_, kw_ = w_oihw.shape
    pad_g = -(-pad // g)
    kprime = 2 * pad_g + 1
    gW = g * width
    # Structural 0/1 selection tensor (numpy constant, folded under jit).
    sel = np.zeros((kprime, kh_, kw_, gW, gW), np.float32)
    for kh in range(kh_):
        dh = kh - pad
        for kw in range(kw_):
            dw = kw - pad
            for r_out in range(g):
                r_abs = r_out + dh
                dg = r_abs // g                     # floor div (negatives ok)
                r_in = r_abs - dg * g
                t = dg + pad_g
                for w_out in range(width):
                    w_in = w_out + dw
                    if 0 <= w_in < width:
                        sel[t, kh, kw, r_in * width + w_in,
                            r_out * width + w_out] = 1.0
    wt = jnp.transpose(w_oihw, (2, 3, 1, 0)).astype(jnp.float32)   # (kh,kw,ci,co)
    mats = jnp.einsum("tabpq,abio->tpiqo", jnp.asarray(sel), wt)
    mats = mats.reshape(kprime, gW * c_in, gW * c_out)
    # bf16 weights: native MXU rate on v6e/v7x and half the VMEM/DMA footprint;
    # matmuls still accumulate in f32.  (On v5e only the MXU path benefits.)
    return mats.astype(jnp.bfloat16)


def _fold_bn(col_sum, col_sq, gamma, beta, gw, c, count):
    """Column (g*W*C,) sums -> per-channel BN scale/shift tiled to (1, g*W*C).

    Single-pass E[x^2]-mean^2 (biased, training-mode BN); fine in f32 at these
    scales — switch to a two-pass / Welford scheme for very large N*H*W."""
    s = col_sum.reshape(gw, c).sum(axis=0)          # (C,)
    q = col_sq.reshape(gw, c).sum(axis=0)
    mean = s / count
    var = jnp.maximum(q / count - mean * mean, 0.0)
    scale_c = gamma.astype(jnp.float32) * jax.lax.rsqrt(var + EPS)
    shift_c = beta.astype(jnp.float32) - mean * scale_c
    return (jnp.tile(scale_c, gw).reshape(1, gw * c),
            jnp.tile(shift_c, gw).reshape(1, gw * c))


def _pick_row_group(h, wc):
    """Smallest row-group g with (g*wc) % 128 == 0 and h % g == 0 (else 1)."""
    base = 128 // math.gcd(wc, 128)
    g = base
    while g <= h:
        if h % g == 0:
            return g
        g += base
    return 1


# ------------------------------- forward -------------------------------------

@partial(jax.jit, static_argnums=(2, 3))
def resblock2d_forward(x_nchw, params, kernel_size, padding):
    n, c, h, w = x_nchw.shape
    assert 2 * padding == kernel_size - 1, "residual add requires 'same' conv"
    g = _pick_row_group(h, w * c)          # lane axis g*W*C multiple of 128
    gw = g * w
    gwc = gw * c
    hr = h // g
    count = float(n * h * w)

    # TODO(synk): when chaining ResBlocks, keep this (N, H/g, g*W*C) layout
    # across blocks and convert NCHW<->NHWC only once at the model boundary.
    x3 = (jnp.transpose(x_nchw, (0, 2, 3, 1))
          .astype(jnp.float32).reshape(n, hr, gwc))

    # norm1 statistics (single-pass Pallas reduction, resident accumulator).
    s1, q1 = bn_stats(x3)
    scale1, shift1 = _fold_bn(s1[0], q1[0], params["g1"], params["b1"],
                              gw, c, count)

    # norm1 + relu + conv1 + bias, fused; also emits stats for norm2.
    wm1 = _banded_conv_weights(params["w1"], w, g, padding)
    b1 = jnp.tile(params["cb1"].astype(jnp.float32), gw).reshape(1, gwc)
    y1, s2, q2 = fused_bn_relu_conv(x3, scale1, shift1, wm1, b1,
                                    residual=None, emit_stats=True)
    scale2, shift2 = _fold_bn(jnp.sum(s2, axis=(0, 1)), jnp.sum(q2, axis=(0, 1)),
                              params["g2"], params["b2"], gw, c, count)

    # norm2 + relu + conv2 + bias + residual, fused.
    wm2 = _banded_conv_weights(params["w2"], w, g, padding)
    b2 = jnp.tile(params["cb2"].astype(jnp.float32), gw).reshape(1, gwc)
    out3 = fused_bn_relu_conv(y1, scale2, shift2, wm2, b2,
                              residual=x3, emit_stats=False)

    return jnp.transpose(out3.reshape(n, h, w, c), (0, 3, 1, 2))


# ------------------------------ reference -----------------------------------

def ref_forward(x, p):
    def bn(t, g, b):
        mean = t.mean(axis=(0, 2, 3), keepdims=True)
        var = ((t - mean) ** 2).mean(axis=(0, 2, 3), keepdims=True)
        return ((t - mean) * jax.lax.rsqrt(var + EPS)
                * g.reshape(1, -1, 1, 1) + b.reshape(1, -1, 1, 1))

    def conv(t, w, b):
        y = jax.lax.conv_general_dilated(
            t, w, (1, 1), ((1, 1), (1, 1)),
            dimension_numbers=("NCHW", "OIHW", "NCHW"),
            precision=jax.lax.Precision.HIGHEST)
        return y + b.reshape(1, -1, 1, 1)

    out = jax.nn.relu(bn(x, p["g1"], p["b1"]))
    out = conv(out, p["w1"], p["cb1"])
    out = jax.nn.relu(bn(out, p["g2"], p["b2"]))
    out = conv(out, p["w2"], p["cb2"])
    return out + x


# -------------------------------- main ---------------------------------------

if __name__ == "__main__":
    N, C, H, W = 2, 4, 16, 16
    kernel_size, padding = 3, 1

    key = jax.random.PRNGKey(0)
    ks = jax.random.split(key, 9)
    x = jax.random.normal(ks[0], (N, C, H, W), jnp.float32)

    params = {
        "w1": 0.1 * jax.random.normal(ks[1], (C, C, kernel_size, kernel_size), jnp.float32),
        "cb1": 0.1 * jax.random.normal(ks[2], (C,), jnp.float32),
        "w2": 0.1 * jax.random.normal(ks[3], (C, C, kernel_size, kernel_size), jnp.float32),
        "cb2": 0.1 * jax.random.normal(ks[4], (C,), jnp.float32),
        "g1": 1.0 + 0.1 * jax.random.normal(ks[5], (C,), jnp.float32),
        "b1": 0.1 * jax.random.normal(ks[6], (C,), jnp.float32),
        "g2": 1.0 + 0.1 * jax.random.normal(ks[7], (C,), jnp.float32),
        "b2": 0.1 * jax.random.normal(ks[8], (C,), jnp.float32),
    }

    out = jax.block_until_ready(resblock2d_forward(x, params, kernel_size, padding))
    ref = jax.block_until_ready(ref_forward(x, params))

    assert out.shape == (N, C, H, W)
    assert bool(jnp.all(jnp.isfinite(out)))
    assert bool(jnp.allclose(out, ref, atol=2e-2, rtol=2e-2)), "mismatch vs reference"

    print("KERNEL_OK")
</pallas_src>

<mosaic_0001>
module attributes {stable_mosaic.version = 11 : i64} {
  func.func @_bn_stats_kernel(%arg0: i32, %arg1: memref<1x8x128xf32, #tpu.memory_space<vmem>>, %arg2: memref<1x128xf32, #tpu.memory_space<vmem>>, %arg3: memref<1x128xf32, #tpu.memory_space<vmem>>) attributes {dimension_semantics = [#tpu.dimension_semantics<arbitrary>], iteration_bounds = array<i64: 2>, scalar_prefetch = 0 : i64, scratch_operands = 0 : i64, tpu.core_type = #tpu.core_type<tc>, window_params = [{transform_indices = @transform_0, window_bounds = array<i64: 1, 8, 128>}, {pipeline_mode = #tpu.pipeline_mode<synchronous>, transform_indices = @transform_1, window_bounds = array<i64: 1, 128>}, {pipeline_mode = #tpu.pipeline_mode<synchronous>, transform_indices = @transform_2, window_bounds = array<i64: 1, 128>}]} {
    %c0_i32 = arith.constant 0 : i32
    %0 = arith.cmpi eq, %arg0, %c0_i32 : i32
    %1 = arith.extui %0 : i1 to i32
    %c0_i32_0 = arith.constant 0 : i32
    %2 = arith.cmpi ne, %1, %c0_i32_0 : i32
    scf.if %2 {
      %cst_12 = arith.constant 0.000000e+00 : f32
      %16 = vector.broadcast %cst_12 : f32 to vector<1x128xf32>
      %c0_13 = arith.constant 0 : index
      %c0_14 = arith.constant 0 : index
      %17 = vector.load %arg2[%c0_13, %c0_14] : memref<1x128xf32, #tpu.memory_space<vmem>>, vector<1x128xf32>
      tpu.vector_store %arg2[%c0_13, %c0_14], %16 {strides = array<i32>} : memref<1x128xf32, #tpu.memory_space<vmem>>, vector<1x128xf32>,
      %cst_15 = arith.constant 0.000000e+00 : f32
      %18 = vector.broadcast %cst_15 : f32 to vector<1x128xf32>
      %c0_16 = arith.constant 0 : index
      %c0_17 = arith.constant 0 : index
      %19 = vector.load %arg3[%c0_16, %c0_17] : memref<1x128xf32, #tpu.memory_space<vmem>>, vector<1x128xf32>
      tpu.vector_store %arg3[%c0_16, %c0_17], %18 {strides = array<i32>} : memref<1x128xf32, #tpu.memory_space<vmem>>, vector<1x128xf32>,
    } else {
    }
    %c0 = arith.constant 0 : index
    %c0_1 = arith.constant 0 : index
    %c0_2 = arith.constant 0 : index
    %3 = vector.load %arg1[%c0, %c0_1, %c0_2] : memref<1x8x128xf32, #tpu.memory_space<vmem>>, vector<1x8x128xf32>
    %4 = vector.shape_cast %3 : vector<1x8x128xf32> to vector<8x128xf32>
    %c0_3 = arith.constant 0 : index
    %c0_4 = arith.constant 0 : index
    %5 = vector.load %arg2[%c0_3, %c0_4] : memref<1x128xf32, #tpu.memory_space<vmem>>, vector<1x128xf32>
    %cst = arith.constant dense<0.000000e+00> : vector<128xf32>
    %6 = vector.multi_reduction <add>, %4, %cst [0] : vector<8x128xf32> to vector<128xf32>
    %7 = vector.shape_cast %6 : vector<128xf32> to vector<1x128xf32>
    %8 = arith.addf %5, %7 : vector<1x128xf32>
    %c0_5 = arith.constant 0 : index
    %c0_6 = arith.constant 0 : index
    %9 = vector.load %arg2[%c0_5, %c0_6] : memref<1x128xf32, #tpu.memory_space<vmem>>, vector<1x128xf32>
    tpu.vector_store %arg2[%c0_5, %c0_6], %8 {strides = array<i32>} : memref<1x128xf32, #tpu.memory_space<vmem>>, vector<1x128xf32>,
    %c0_7 = arith.constant 0 : index
    %c0_8 = arith.constant 0 : index
    %10 = vector.load %arg3[%c0_7, %c0_8] : memref<1x128xf32, #tpu.memory_space<vmem>>, vector<1x128xf32>
    %11 = arith.mulf %4, %4 : vector<8x128xf32>
    %cst_9 = arith.constant dense<0.000000e+00> : vector<128xf32>
    %12 = vector.multi_reduction <add>, %11, %cst_9 [0] : vector<8x128xf32> to vector<128xf32>
    %13 = vector.shape_cast %12 : vector<128xf32> to vector<1x128xf32>
    %14 = arith.addf %10, %13 : vector<1x128xf32>
    %c0_10 = arith.constant 0 : index
    %c0_11 = arith.constant 0 : index
    %15 = vector.load %arg3[%c0_10, %c0_11] : memref<1x128xf32, #tpu.memory_space<vmem>>, vector<1x128xf32>
    tpu.vector_store %arg3[%c0_10, %c0_11], %14 {strides = array<i32>} : memref<1x128xf32, #tpu.memory_space<vmem>>, vector<1x128xf32>,
    return
  }
  func.func @transform_0(%arg0: i32) -> (i32, i32, i32) {
    %c0_i32 = arith.constant 0 : i32
    %c0_i32_0 = arith.constant 0 : i32
    %c0_i32_1 = arith.constant 0 : i32
    return %arg0, %c0_i32, %c0_i32_0 : i32, i32, i32
  }
  func.func @transform_1(%arg0: i32) -> (i32, i32) {
    %c0_i32 = arith.constant 0 : i32
    %c0_i32_0 = arith.constant 0 : i32
    %c0_i32_1 = arith.constant 0 : i32
    return %c0_i32, %c0_i32_0 : i32, i32
  }
  func.func @transform_2(%arg0: i32) -> (i32, i32) {
    %c0_i32 = arith.constant 0 : i32
    %c0_i32_0 = arith.constant 0 : i32
    %c0_i32_1 = arith.constant 0 : i32
    return %c0_i32, %c0_i32_0 : i32, i32
  }
}

module attributes {stable_mosaic.version = 11 : i64} {
  func.func @kernel(%arg0: i32, %arg1: memref<1x8x128xf32, #tpu.memory_space<vmem>>, %arg2: memref<1x128xf32, #tpu.memory_space<vmem>>, %arg3: memref<1x128xf32, #tpu.memory_space<vmem>>, %arg4: memref<384x128xbf16, #tpu.memory_space<vmem>>, %arg5: memref<1x128xf32, #tpu.memory_space<vmem>>, %arg6: memref<1x8x128xf32, #tpu.memory_space<vmem>>, %arg7: memref<1x1x128xf32, #tpu.memory_space<vmem>>, %arg8: memref<1x1x128xf32, #tpu.memory_space<vmem>>, %arg9: memref<10x128xf32, #tpu.memory_space<vmem>>) attributes {dimension_semantics = [#tpu.dimension_semantics<parallel>], iteration_bounds = array<i64: 2>, scalar_prefetch = 0 : i64, scratch_operands = 1 : i64, tpu.core_type = #tpu.core_type<tc>, window_params = [{transform_indices = @transform_0, window_bounds = array<i64: 1, 8, 128>}, {pipeline_mode = #tpu.pipeline_mode<synchronous>, transform_indices = @transform_1, window_bounds = array<i64: 1, 128>}, {pipeline_mode = #tpu.pipeline_mode<synchronous>, transform_indices = @transform_2, window_bounds = array<i64: 1, 128>}, {pipeline_mode = #tpu.pipeline_mode<synchronous>, transform_indices = @transform_3, window_bounds = array<i64: 384, 128>}, {pipeline_mode = #tpu.pipeline_mode<synchronous>, transform_indices = @transform_4, window_bounds = array<i64: 1, 128>}, {transform_indices = @transform_5, window_bounds = array<i64: 1, 8, 128>}, {transform_indices = @transform_6, window_bounds = array<i64: 1, 1, 128>}, {transform_indices = @transform_7, window_bounds = array<i64: 1, 1, 128>}]} {
    %c0 = arith.constant 0 : index
    %c0_0 = arith.constant 0 : index
    %c0_1 = arith.constant 0 : index
    %0 = vector.load %arg1[%c0, %c0_0, %c0_1] : memref<1x8x128xf32, #tpu.memory_space<vmem>>, vector<1x8x128xf32>
    %1 = vector.shape_cast %0 : vector<1x8x128xf32> to vector<8x128xf32>
    %c0_2 = arith.constant 0 : index
    %c0_3 = arith.constant 0 : index
    %2 = vector.load %arg2[%c0_2, %c0_3] : memref<1x128xf32, #tpu.memory_space<vmem>>, vector<1x128xf32>
    %3 = vector.broadcast %2 : vector<1x128xf32> to vector<8x128xf32>
    %4 = arith.mulf %1, %3 : vector<8x128xf32>
    %c0_4 = arith.constant 0 : index
    %c0_5 = arith.constant 0 : index
    %5 = vector.load %arg3[%c0_4, %c0_5] : memref<1x128xf32, #tpu.memory_space<vmem>>, vector<1x128xf32>
    %6 = vector.broadcast %5 : vector<1x128xf32> to vector<8x128xf32>
    %7 = arith.addf %4, %6 : vector<8x128xf32>
    %cst = arith.constant 0.000000e+00 : f32
    %8 = vector.broadcast %cst : f32 to vector<8x128xf32>
    %9 = arith.maximumf %7, %8 : vector<8x128xf32>
    %cst_6 = arith.constant 0.000000e+00 : f32
    %10 = vector.broadcast %cst_6 : f32 to vector<1x128xf32>
    %c0_7 = arith.constant 0 : index
    %c0_8 = arith.constant 0 : index
    %11 = vector.load %arg9[%c0_7, %c0_8] : memref<10x128xf32, #tpu.memory_space<vmem>>, vector<1x128xf32>
    tpu.vector_store %arg9[%c0_7, %c0_8], %10 {strides = array<i32>} : memref<10x128xf32, #tpu.memory_space<vmem>>, vector<1x128xf32>,
    %c9 = arith.constant 9 : index
    %c0_9 = arith.constant 0 : index
    %12 = vector.load %arg9[%c9, %c0_9] : memref<10x128xf32, #tpu.memory_space<vmem>>, vector<1x128xf32>
    tpu.vector_store %arg9[%c9, %c0_9], %10 {strides = array<i32>} : memref<10x128xf32, #tpu.memory_space<vmem>>, vector<1x128xf32>,
    %c1 = arith.constant 1 : index
    %c0_10 = arith.constant 0 : index
    %13 = vector.load %arg9[%c1, %c0_10] : memref<10x128xf32, #tpu.memory_space<vmem>>, vector<8x128xf32>
    tpu.vector_store %arg9[%c1, %c0_10], %9 {strides = array<i32>} : memref<10x128xf32, #tpu.memory_space<vmem>>, vector<8x128xf32>,
    %c0_11 = arith.constant 0 : index
    %c0_12 = arith.constant 0 : index
    %14 = vector.load %arg9[%c0_11, %c0_12] : memref<10x128xf32, #tpu.memory_space<vmem>>, vector<8x128xf32>
    %c1_13 = arith.constant 1 : index
    %c0_14 = arith.constant 0 : index
    %15 = vector.load %arg9[%c1_13, %c0_14] : memref<10x128xf32, #tpu.memory_space<vmem>>, vector<8x128xf32>
    %c2 = arith.constant 2 : index
    %c0_15 = arith.constant 0 : index
    %16 = vector.load %arg9[%c2, %c0_15] : memref<10x128xf32, #tpu.memory_space<vmem>>, vector<8x128xf32>
    %17 = tpu.concatenate %14, %15, %16 in 1 : vector<8x128xf32>, vector<8x128xf32>, vector<8x128xf32> -> vector<8x384xf32>
    %18 = arith.truncf %17 : vector<8x384xf32> to vector<8x384xbf16>
    %c0_16 = arith.constant 0 : index
    %c0_17 = arith.constant 0 : index
    %19 = vector.load %arg4[%c0_16, %c0_17] : memref<384x128xbf16, #tpu.memory_space<vmem>>, vector<384x128xbf16>
    %cst_18 = arith.constant dense<0.000000e+00> : vector<8x128xf32>
    %20 = tpu.matmul %18, %19, %cst_18 {dimension_numbers = #tpu.dot_dimension_numbers<[1], [0], [0], [1], [0, 0, 1, 1], [], []>} : vector<8x384xbf16>, vector<384x128xbf16>, vector<8x128xf32> -> vector<8x128xf32>
    %c0_19 = arith.constant 0 : index
    %c0_20 = arith.constant 0 : index
    %21 = vector.load %arg5[%c0_19, %c0_20] : memref<1x128xf32, #tpu.memory_space<vmem>>, vector<1x128xf32>
    %22 = vector.broadcast %21 : vector<1x128xf32> to vector<8x128xf32>
    %23 = arith.addf %20, %22 : vector<8x128xf32>
    %c0_21 = arith.constant 0 : index
    %c0_22 = arith.constant 0 : index
    %c0_23 = arith.constant 0 : index
    %24 = vector.load %arg6[%c0_21, %c0_22, %c0_23] : memref<1x8x128xf32, #tpu.memory_space<vmem>>, vector<1x8x128xf32>
    %25 = vector.shape_cast %24 : vector<1x8x128xf32> to vector<8x128xf32>
    %26 = vector.shape_cast %23 : vector<8x128xf32> to vector<1x8x128xf32>
    tpu.vector_store %arg6[%c0_21, %c0_22, %c0_23], %26 {strides = array<i32>} : memref<1x8x128xf32, #tpu.memory_space<vmem>>, vector<1x8x128xf32>,
    %cst_24 = arith.constant dense<0.000000e+00> : vector<128xf32>
    %27 = vector.multi_reduction <add>, %23, %cst_24 [0] : vector<8x128xf32> to vector<128xf32>
    %28 = vector.shape_cast %27 : vector<128xf32> to vector<1x128xf32>
    %c0_25 = arith.constant 0 : index
    %c0_26 = arith.constant 0 : index
    %c0_27 = arith.constant 0 : index
    %29 = vector.load %arg7[%c0_25, %c0_26, %c0_27] : memref<1x1x128xf32, #tpu.memory_space<vmem>>, vector<1x1x128xf32>
    %30 = vector.shape_cast %29 : vector<1x1x128xf32> to vector<1x128xf32>
    %31 = vector.shape_cast %28 : vector<1x128xf32> to vector<1x1x128xf32>
    tpu.vector_store %arg7[%c0_25, %c0_26, %c0_27], %31 {strides = array<i32>} : memref<1x1x128xf32, #tpu.memory_space<vmem>>, vector<1x1x128xf32>,
    %32 = arith.mulf %23, %23 : vector<8x128xf32>
    %cst_28 = arith.constant dense<0.000000e+00> : vector<128xf32>
    %33 = vector.multi_reduction <add>, %32, %cst_28 [0] : vector<8x128xf32> to vector<128xf32>
    %34 = vector.shape_cast %33 : vector<128xf32> to vector<1x128xf32>
    %c0_29 = arith.constant 0 : index
    %c0_30 = arith.constant 0 : index
    %c0_31 = arith.constant 0 : index
    %35 = vector.load %arg8[%c0_29, %c0_30, %c0_31] : memref<1x1x128xf32, #tpu.memory_space<vmem>>, vector<1x1x128xf32>
    %36 = vector.shape_cast %35 : vector<1x1x128xf32> to vector<1x128xf32>
    %37 = vector.shape_cast %34 : vector<1x128xf32> to vector<1x1x128xf32>
    tpu.vector_store %arg8[%c0_29, %c0_30, %c0_31], %37 {strides = array<i32>} : memref<1x1x128xf32, #tpu.memory_space<vmem>>, vector<1x1x128xf32>,
    return
  }
  func.func @transform_0(%arg0: i32) -> (i32, i32, i32) {
    %c0_i32 = arith.constant 0 : i32
    %c0_i32_0 = arith.constant 0 : i32
    %c0_i32_1 = arith.constant 0 : i32
    return %arg0, %c0_i32, %c0_i32_0 : i32, i32, i32
  }
  func.func @transform_1(%arg0: i32) -> (i32, i32) {
    %c0_i32 = arith.constant 0 : i32
    %c0_i32_0 = arith.constant 0 : i32
    %c0_i32_1 = arith.constant 0 : i32
    return %c0_i32, %c0_i32_0 : i32, i32
  }
  func.func @transform_2(%arg0: i32) -> (i32, i32) {
    %c0_i32 = arith.constant 0 : i32
    %c0_i32_0 = arith.constant 0 : i32
    %c0_i32_1 = arith.constant 0 : i32
    return %c0_i32, %c0_i32_0 : i32, i32
  }
  func.func @transform_3(%arg0: i32) -> (i32, i32) {
    %c0_i32 = arith.constant 0 : i32
    %c0_i32_0 = arith.constant 0 : i32
    %c0_i32_1 = arith.constant 0 : i32
    return %c0_i32, %c0_i32_0 : i32, i32
  }
  func.func @transform_4(%arg0: i32) -> (i32, i32) {
    %c0_i32 = arith.constant 0 : i32
    %c0_i32_0 = arith.constant 0 : i32
    %c0_i32_1 = arith.constant 0 : i32
    return %c0_i32, %c0_i32_0 : i32, i32
  }
  func.func @transform_5(%arg0: i32) -> (i32, i32, i32) {
    %c0_i32 = arith.constant 0 : i32
    %c0_i32_0 = arith.constant 0 : i32
    %c0_i32_1 = arith.constant 0 : i32
    return %arg0, %c0_i32, %c0_i32_0 : i32, i32, i32
  }
  func.func @transform_6(%arg0: i32) -> (i32, i32, i32) {
    %c0_i32 = arith.constant 0 : i32
    %c0_i32_0 = arith.constant 0 : i32
    %c0_i32_1 = arith.constant 0 : i32
    return %arg0, %c0_i32, %c0_i32_0 : i32, i32, i32
  }
  func.func @transform_7(%arg0: i32) -> (i32, i32, i32) {
    %c0_i32 = arith.constant 0 : i32
    %c0_i32_0 = arith.constant 0 : i32
    %c0_i32_1 = arith.constant 0 : i32
    return %arg0, %c0_i32, %c0_i32_0 : i32, i32, i32
  }
}

module attributes {stable_mosaic.version = 11 : i64} {
  func.func @kernel(%arg0: i32, %arg1: memref<1x8x128xf32, #tpu.memory_space<vmem>>, %arg2: memref<1x128xf32, #tpu.memory_space<vmem>>, %arg3: memref<1x128xf32, #tpu.memory_space<vmem>>, %arg4: memref<384x128xbf16, #tpu.memory_space<vmem>>, %arg5: memref<1x128xf32, #tpu.memory_space<vmem>>, %arg6: memref<1x8x128xf32, #tpu.memory_space<vmem>>, %arg7: memref<1x8x128xf32, #tpu.memory_space<vmem>>, %arg8: memref<10x128xf32, #tpu.memory_space<vmem>>) attributes {dimension_semantics = [#tpu.dimension_semantics<parallel>], iteration_bounds = array<i64: 2>, scalar_prefetch = 0 : i64, scratch_operands = 1 : i64, tpu.core_type = #tpu.core_type<tc>, window_params = [{transform_indices = @transform_0, window_bounds = array<i64: 1, 8, 128>}, {pipeline_mode = #tpu.pipeline_mode<synchronous>, transform_indices = @transform_1, window_bounds = array<i64: 1, 128>}, {pipeline_mode = #tpu.pipeline_mode<synchronous>, transform_indices = @transform_2, window_bounds = array<i64: 1, 128>}, {pipeline_mode = #tpu.pipeline_mode<synchronous>, transform_indices = @transform_3, window_bounds = array<i64: 384, 128>}, {pipeline_mode = #tpu.pipeline_mode<synchronous>, transform_indices = @transform_4, window_bounds = array<i64: 1, 128>}, {transform_indices = @transform_5, window_bounds = array<i64: 1, 8, 128>}, {transform_indices = @transform_6, window_bounds = array<i64: 1, 8, 128>}]} {
    %c0 = arith.constant 0 : index
    %c0_0 = arith.constant 0 : index
    %c0_1 = arith.constant 0 : index
    %0 = vector.load %arg1[%c0, %c0_0, %c0_1] : memref<1x8x128xf32, #tpu.memory_space<vmem>>, vector<1x8x128xf32>
    %1 = vector.shape_cast %0 : vector<1x8x128xf32> to vector<8x128xf32>
    %c0_2 = arith.constant 0 : index
    %c0_3 = arith.constant 0 : index
    %2 = vector.load %arg2[%c0_2, %c0_3] : memref<1x128xf32, #tpu.memory_space<vmem>>, vector<1x128xf32>
    %3 = vector.broadcast %2 : vector<1x128xf32> to vector<8x128xf32>
    %4 = arith.mulf %1, %3 : vector<8x128xf32>
    %c0_4 = arith.constant 0 : index
    %c0_5 = arith.constant 0 : index
    %5 = vector.load %arg3[%c0_4, %c0_5] : memref<1x128xf32, #tpu.memory_space<vmem>>, vector<1x128xf32>
    %6 = vector.broadcast %5 : vector<1x128xf32> to vector<8x128xf32>
    %7 = arith.addf %4, %6 : vector<8x128xf32>
    %cst = arith.constant 0.000000e+00 : f32
    %8 = vector.broadcast %cst : f32 to vector<8x128xf32>
    %9 = arith.maximumf %7, %8 : vector<8x128xf32>
    %cst_6 = arith.constant 0.000000e+00 : f32
    %10 = vector.broadcast %cst_6 : f32 to vector<1x128xf32>
    %c0_7 = arith.constant 0 : index
    %c0_8 = arith.constant 0 : index
    %11 = vector.load %arg8[%c0_7, %c0_8] : memref<10x128xf32, #tpu.memory_space<vmem>>, vector<1x128xf32>
    tpu.vector_store %arg8[%c0_7, %c0_8], %10 {strides = array<i32>} : memref<10x128xf32, #tpu.memory_space<vmem>>, vector<1x128xf32>,
    %c9 = arith.constant 9 : index
    %c0_9 = arith.constant 0 : index
    %12 = vector.load %arg8[%c9, %c0_9] : memref<10x128xf32, #tpu.memory_space<vmem>>, vector<1x128xf32>
    tpu.vector_store %arg8[%c9, %c0_9], %10 {strides = array<i32>} : memref<10x128xf32, #tpu.memory_space<vmem>>, vector<1x128xf32>,
    %c1 = arith.constant 1 : index
    %c0_10 = arith.constant 0 : index
    %13 = vector.load %arg8[%c1, %c0_10] : memref<10x128xf32, #tpu.memory_space<vmem>>, vector<8x128xf32>
    tpu.vector_store %arg8[%c1, %c0_10], %9 {strides = array<i32>} : memref<10x128xf32, #tpu.memory_space<vmem>>, vector<8x128xf32>,
    %c0_11 = arith.constant 0 : index
    %c0_12 = arith.constant 0 : index
    %14 = vector.load %arg8[%c0_11, %c0_12] : memref<10x128xf32, #tpu.memory_space<vmem>>, vector<8x128xf32>
    %c1_13 = arith.constant 1 : index
    %c0_14 = arith.constant 0 : index
    %15 = vector.load %arg8[%c1_13, %c0_14] : memref<10x128xf32, #tpu.memory_space<vmem>>, vector<8x128xf32>
    %c2 = arith.constant 2 : index
    %c0_15 = arith.constant 0 : index
    %16 = vector.load %arg8[%c2, %c0_15] : memref<10x128xf32, #tpu.memory_space<vmem>>, vector<8x128xf32>
    %17 = tpu.concatenate %14, %15, %16 in 1 : vector<8x128xf32>, vector<8x128xf32>, vector<8x128xf32> -> vector<8x384xf32>
    %18 = arith.truncf %17 : vector<8x384xf32> to vector<8x384xbf16>
    %c0_16 = arith.constant 0 : index
    %c0_17 = arith.constant 0 : index
    %19 = vector.load %arg4[%c0_16, %c0_17] : memref<384x128xbf16, #tpu.memory_space<vmem>>, vector<384x128xbf16>
    %cst_18 = arith.constant dense<0.000000e+00> : vector<8x128xf32>
    %20 = tpu.matmul %18, %19, %cst_18 {dimension_numbers = #tpu.dot_dimension_numbers<[1], [0], [0], [1], [0, 0, 1, 1], [], []>} : vector<8x384xbf16>, vector<384x128xbf16>, vector<8x128xf32> -> vector<8x128xf32>
    %c0_19 = arith.constant 0 : index
    %c0_20 = arith.constant 0 : index
    %21 = vector.load %arg5[%c0_19, %c0_20] : memref<1x128xf32, #tpu.memory_space<vmem>>, vector<1x128xf32>
    %22 = vector.broadcast %21 : vector<1x128xf32> to vector<8x128xf32>
    %23 = arith.addf %20, %22 : vector<8x128xf32>
    %c0_21 = arith.constant 0 : index
    %c0_22 = arith.constant 0 : index
    %c0_23 = arith.constant 0 : index
    %24 = vector.load %arg6[%c0_21, %c0_22, %c0_23] : memref<1x8x128xf32, #tpu.memory_space<vmem>>, vector<1x8x128xf32>
    %25 = vector.shape_cast %24 : vector<1x8x128xf32> to vector<8x128xf32>
    %26 = arith.addf %23, %25 : vector<8x128xf32>
    %c0_24 = arith.constant 0 : index
    %c0_25 = arith.constant 0 : index
    %c0_26 = arith.constant 0 : index
    %27 = vector.load %arg7[%c0_24, %c0_25, %c0_26] : memref<1x8x128xf32, #tpu.memory_space<vmem>>, vector<1x8x128xf32>
    %28 = vector.shape_cast %27 : vector<1x8x128xf32> to vector<8x128xf32>
    %29 = vector.shape_cast %26 : vector<8x128xf32> to vector<1x8x128xf32>
    tpu.vector_store %arg7[%c0_24, %c0_25, %c0_26], %29 {strides = array<i32>} : memref<1x8x128xf32, #tpu.memory_space<vmem>>, vector<1x8x128xf32>,
    return
  }
  func.func @transform_0(%arg0: i32) -> (i32, i32, i32) {
    %c0_i32 = arith.constant 0 : i32
    %c0_i32_0 = arith.constant 0 : i32
    %c0_i32_1 = arith.constant 0 : i32
    return %arg0, %c0_i32, %c0_i32_0 : i32, i32, i32
  }
  func.func @transform_1(%arg0: i32) -> (i32, i32) {
    %c0_i32 = arith.constant 0 : i32
    %c0_i32_0 = arith.constant 0 : i32
    %c0_i32_1 = arith.constant 0 : i32
    return %c0_i32, %c0_i32_0 : i32, i32
  }
  func.func @transform_2(%arg0: i32) -> (i32, i32) {
    %c0_i32 = arith.constant 0 : i32
    %c0_i32_0 = arith.constant 0 : i32
    %c0_i32_1 = arith.constant 0 : i32
    return %c0_i32, %c0_i32_0 : i32, i32
  }
  func.func @transform_3(%arg0: i32) -> (i32, i32) {
    %c0_i32 = arith.constant 0 : i32
    %c0_i32_0 = arith.constant 0 : i32
    %c0_i32_1 = arith.constant 0 : i32
    return %c0_i32, %c0_i32_0 : i32, i32
  }
  func.func @transform_4(%arg0: i32) -> (i32, i32) {
    %c0_i32 = arith.constant 0 : i32
    %c0_i32_0 = arith.constant 0 : i32
    %c0_i32_1 = arith.constant 0 : i32
    return %c0_i32, %c0_i32_0 : i32, i32
  }
  func.func @transform_5(%arg0: i32) -> (i32, i32, i32) {
    %c0_i32 = arith.constant 0 : i32
    %c0_i32_0 = arith.constant 0 : i32
    %c0_i32_1 = arith.constant 0 : i32
    return %arg0, %c0_i32, %c0_i32_0 : i32, i32, i32
  }
  func.func @transform_6(%arg0: i32) -> (i32, i32, i32) {
    %c0_i32 = arith.constant 0 : i32
    %c0_i32_0 = arith.constant 0 : i32
    %c0_i32_1 = arith.constant 0 : i32
    return %arg0, %c0_i32, %c0_i32_0 : i32, i32, i32
  }
}

</mosaic_0001>

<bundles_post_ra>
// kernel: squeeze.2
= control target key start
LH: loop header
LB: loop body
LE: loop exit
PB: predicated region body
PF: predicated region fallthrough
CT: control target
= control target key end

     0   :  { %s258_s8 = smov 116   ;;  %s259_s9 = smov 120   ;;  %vm7_vm0 = vcmask 31744   ;;  %s429_s0 = inlined_call_operand.vmem [shape: f32[128], index: 0, kind: input, shape index: {}]   ;;  %s430_s1 = inlined_call_operand.vmem [shape: f32[32,4], index: 1, kind: output, shape index: {}]  }
   0x1   :  { %v4_v0 = vld [vmem:[%s429_s0] sm:$0x1]  ;;  %s257_s0 = smov 124   ;;  %s260_s10 = smov 112  }
   0x2   :  { %5 = vst [vmem:[#allocation0] sm:$0x1] %v4_v0  ;;  %s261_s11 = smov 108   ;;  %s262_s12 = smov 104  }
   0x3   :  { %s263_s13 = smov 100   ;;  %s264_s14 = smov 96  }
   0x4   :  { %s265_s15 = smov 92   ;;  %s266_s16 = smov 88  }
   0x5   :  { %s267_s17 = smov 84   ;;  %s268_s18 = smov 80  }
   0x6   :  { %s269_s19 = smov 76   ;;  %s270_s20 = smov 72  }
   0x7   :  { %s271_s21 = smov 68   ;;  %s272_s22 = smov 64  }
   0x8   :  { %s273_s23 = smov 60   ;;  %s274_s24 = smov 56  }
   0x9   :  { %v9_v1 = vld [vmem:[#allocation0] sm:$0x1]   ;;  %s275_s25 = smov 52   ;;  %s276_s26 = smov 48  }
   0xa   :  { %v21_v2 = vld [vmem:[#allocation0] sm:$0x1]   ;;  %10 = vrot.lane.b32.xlu0 %v9_v1, %s257_s0  ;;  %s277_s27 = smov 44   ;;  %s278_s28 = smov 40  }
   0xb   :  { %22 = vrot.lane.b32.xlu1 %v21_v2, %s258_s8  ;;  %v15_v3 = vld [vmem:[#allocation0] sm:$0x1]   ;;  %s279_s29 = smov 36   ;;  %s280_s30 = smov 32  }
   0xc   :  { %v27_v4 = vld [vmem:[#allocation0] sm:$0x1]   ;;  %s281_s4 = smov 28   ;;  %s282_s5 = smov 24  }
   0xd   :  { %v33_v5 = vld [vmem:[#allocation0] sm:$0x1]   ;;  %s283_s6 = smov 20   ;;  %s284_s7 = smov 16  }
   0xe   :  { %16 = vrot.lane.b32.xlu0 %v15_v3, %s259_s9  ;;  %v39_v6 = vld [vmem:[#allocation0] sm:$0x1]   ;;  %s285_s0 = smov 12   ;;  %s286_s8 = smov 8  }
   0xf   :  { %28 = vrot.lane.b32.xlu1 %v27_v4, %s260_s10  ;;  %v45_v7 = vld [vmem:[#allocation0] sm:$0x1]   ;;  %s287_s9 = smov 4  }
  0x10   :  { %v51_v8 = vld [vmem:[#allocation0] sm:$0x1]  }
  0x11   :  { %v57_v9 = vld [vmem:[#allocation0] sm:$0x1]  }
  0x12   :  { %34 = vrot.lane.b32.xlu0 %v33_v5, %s261_s11  ;;  %v63_v10 = vld [vmem:[#allocation0] sm:$0x1]  }
  0x13   :  { %40 = vrot.lane.b32.xlu1 %v39_v6, %s262_s12  ;;  %v69_v11 = vld [vmem:[#allocation0] sm:$0x1]  }
  0x14   :  { %v75_v12 = vld [vmem:[#allocation0] sm:$0x1]  }
  0x15   :  { %v81_v13 = vld [vmem:[#allocation0] sm:$0x1]  }
  0x16   :  { %46 = vrot.lane.b32.xlu0 %v45_v7, %s263_s13  ;;  %v87_v14 = vld [vmem:[#allocation0] sm:$0x1]  }
  0x17   :  { %52 = vrot.lane.b32.xlu1 %v51_v8, %s264_s14  ;;  %v93_v15 = vld [vmem:[#allocation0] sm:$0x1]  }
  0x18   :  { %v99_v16 = vld [vmem:[#allocation0] sm:$0x1]  }
  0x19   :  { %v105_v17 = vld [vmem:[#allocation0] sm:$0x1]  }
  0x1a   :  { %58 = vrot.lane.b32.xlu0 %v57_v9, %s265_s15  ;;  %v111_v18 = vld [vmem:[#allocation0] sm:$0x1]  }
  0x1b   :  { %64 = vrot.lane.b32.xlu1 %v63_v10, %s266_s16  ;;  %v117_v19 = vld [vmem:[#allocation0] sm:$0x1]  }
  0x1c   :  { %v123_v20 = vld [vmem:[#allocation0] sm:$0x1]  }
  0x1d   :  { %v129_v21 = vld [vmem:[#allocation0] sm:$0x1]  }
  0x1e   :  { %70 = vrot.lane.b32.xlu0 %v69_v11, %s267_s17  ;;  %v135_v22 = vld [vmem:[#allocation0] sm:$0x1]  }
  0x1f   :  { %76 = vrot.lane.b32.xlu1 %v75_v12, %s268_s18  ;;  %v141_v23 = vld [vmem:[#allocation0] sm:$0x1]  }
  0x20   :  { %v147_v24 = vld [vmem:[#allocation0] sm:$0x1]  }
  0x21   :  { %v153_v25 = vld [vmem:[#allocation0] sm:$0x1]  }
  0x22   :  { %82 = vrot.lane.b32.xlu0 %v81_v13, %s269_s19  ;;  %v159_v26 = vld [vmem:[#allocation0] sm:$0x1]  }
  0x23   :  { %88 = vrot.lane.b32.xlu1 %v87_v14, %s270_s20  ;;  %v6_v27 = vld [vmem:[#allocation0] sm:$0x1]  }
  0x24   :  { %8 = vst.msk [vmem:[%s430_s1] sm:$0x1] %vm7_vm0, %v6_v27   ;;  %v165_v28 = vld [vmem:[#allocation0] sm:$0x1]  }
  0x25   :  { %v171_v29 = vld [vmem:[#allocation0] sm:$0x1]  }
  0x26   :  { %94 = vrot.lane.b32.xlu0 %v93_v15, %s271_s21  ;;  %v177_v30 = vld [vmem:[#allocation0] sm:$0x1]  }
  0x27   :  { %100 = vrot.lane.b32.xlu1 %v99_v16, %s272_s22  ;;  %v183_v31 = vld [vmem:[#allocation0] sm:$0x1]  }
  0x28   :  { %v189_v32 = vld [vmem:[#allocation0] sm:$0x1]  }
  0x2a   :  { %106 = vrot.lane.b32.xlu0 %v105_v17, %s273_s23 }
  0x2b   :  { %112 = vrot.lane.b32.xlu1 %v111_v18, %s274_s24 }
  0x2e   :  { %118 = vrot.lane.b32.xlu0 %v117_v19, %s275_s25 }
  0x2f   :  { %124 = vrot.lane.b32.xlu1 %v123_v20, %s276_s26 }
  0x32   :  { %130 = vrot.lane.b32.xlu0 %v129_v21, %s277_s27 }
  0x33   :  { %136 = vrot.lane.b32.xlu1 %v135_v22, %s278_s28 }
  0x36   :  { %142 = vrot.lane.b32.xlu0 %v141_v23, %s279_s29 }
  0x37   :  { %148 = vrot.lane.b32.xlu1 %v147_v24, %s280_s30 }
  0x3a   :  { %154 = vrot.lane.b32.xlu0 %v153_v25, %s281_s4 }
  0x3b   :  { %160 = vrot.lane.b32.xlu1 %v159_v26, %s282_s5 }
  0x3e   :  { %166 = vrot.lane.b32.xlu0 %v165_v28, %s283_s6 }
  0x3f   :  { %172 = vrot.lane.b32.xlu1 %v171_v29, %s284_s7 }
  0x42   :  { %178 = vrot.lane.b32.xlu0 %v177_v30, %s285_s0 }
  0x43   :  { %184 = vrot.lane.b32.xlu1 %v183_v31, %s286_s8 }
  0x46   :  { %190 = vrot.lane.b32.xlu0 %v189_v32, %s287_s9 }
  0x7c   :  { %v11_v33 = vpop.permute.xlu0 %10  }
  0x7d   :  { %v23_v34 = vpop.permute.xlu1 %22   ;;  %195 = vst.msk [vmem:[%s430_s1 + $0x1] sm:$0x1] %vm7_vm0, %v11_v33  }
  0x7e   :  { %197 = vst.msk [vmem:[%s430_s1 + $0x3] sm:$0x1] %vm7_vm0, %v23_v34  }
  0x80   :  { %v17_v35 = vpop.permute.xlu0 %16  }
  0x81   :  { %v29_v36 = vpop.permute.xlu1 %28   ;;  %196 = vst.msk [vmem:[%s430_s1 + $0x2] sm:$0x1] %vm7_vm0, %v17_v35  }
  0x82   :  { %198 = vst.msk [vmem:[%s430_s1 + $0x4] sm:$0x1] %vm7_vm0, %v29_v36  }
  0x84   :  { %v35_v37 = vpop.permute.xlu0 %34  }
  0x85   :  { %v41_v38 = vpop.permute.xlu1 %40   ;;  %199 = vst.msk [vmem:[%s430_s1 + $0x5] sm:$0x1] %vm7_vm0, %v35_v37  }
  0x86   :  { %200 = vst.msk [vmem:[%s430_s1 + $0x6] sm:$0x1] %vm7_vm0, %v41_v38  }
  0x88   :  { %v47_v39 = vpop.permute.xlu0 %46  }
  0x89   :  { %v53_v40 = vpop.permute.xlu1 %52   ;;  %201 = vst.msk [vmem:[%s430_s1 + $0x7] sm:$0x1] %vm7_vm0, %v47_v39  }
  0x8a   :  { %202 = vst.msk [vmem:[%s430_s1 + $0x8] sm:$0x1] %vm7_vm0, %v53_v40  }
  0x8c   :  { %v59_v41 = vpop.permute.xlu0 %58  }
  0x8d   :  { %v65_v42 = vpop.permute.xlu1 %64   ;;  %203 = vst.msk [vmem:[%s430_s1 + $0x9] sm:$0x1] %vm7_vm0, %v59_v41  }
  0x8e   :  { %204 = vst.msk [vmem:[%s430_s1 + $0xa] sm:$0x1] %vm7_vm0, %v65_v42  }
  0x90   :  { %v71_v43 = vpop.permute.xlu0 %70  }
  0x91   :  { %v77_v44 = vpop.permute.xlu1 %76   ;;  %205 = vst.msk [vmem:[%s430_s1 + $0xb] sm:$0x1] %vm7_vm0, %v71_v43  }
  0x92   :  { %206 = vst.msk [vmem:[%s430_s1 + $0xc] sm:$0x1] %vm7_vm0, %v77_v44  }
  0x94   :  { %v83_v45 = vpop.permute.xlu0 %82  }
  0x95   :  { %v89_v46 = vpop.permute.xlu1 %88   ;;  %207 = vst.msk [vmem:[%s430_s1 + $0xd] sm:$0x1] %vm7_vm0, %v83_v45  }
  0x96   :  { %208 = vst.msk [vmem:[%s430_s1 + $0xe] sm:$0x1] %vm7_vm0, %v89_v46  }
  0x98   :  { %v95_v47 = vpop.permute.xlu0 %94  }
  0x99   :  { %v101_v48 = vpop.permute.xlu1 %100   ;;  %209 = vst.msk [vmem:[%s430_s1 + $0xf] sm:$0x1] %vm7_vm0, %v95_v47  }
  0x9a   :  { %210 = vst.msk [vmem:[%s430_s1 + $0x10] sm:$0x1] %vm7_vm0, %v101_v48  }
  0x9c   :  { %v107_v49 = vpop.permute.xlu0 %106  }
  0x9d   :  { %v113_v50 = vpop.permute.xlu1 %112   ;;  %211 = vst.msk [vmem:[%s430_s1 + $0x11] sm:$0x1] %vm7_vm0, %v107_v49  }
  0x9e   :  { %212 = vst.msk [vmem:[%s430_s1 + $0x12] sm:$0x1] %vm7_vm0, %v113_v50  }
  0xa0   :  { %v119_v51 = vpop.permute.xlu0 %118  }
  0xa1   :  { %v125_v52 = vpop.permute.xlu1 %124   ;;  %213 = vst.msk [vmem:[%s430_s1 + $0x13] sm:$0x1] %vm7_vm0, %v119_v51  }
  0xa2   :  { %214 = vst.msk [vmem:[%s430_s1 + $0x14] sm:$0x1] %vm7_vm0, %v125_v52  }
  0xa4   :  { %v131_v53 = vpop.permute.xlu0 %130  }
  0xa5   :  { %v137_v54 = vpop.permute.xlu1 %136   ;;  %215 = vst.msk [vmem:[%s430_s1 + $0x15] sm:$0x1] %vm7_vm0, %v131_v53  }
  0xa6   :  { %216 = vst.msk [vmem:[%s430_s1 + $0x16] sm:$0x1] %vm7_vm0, %v137_v54  }
  0xa8   :  { %v143_v55 = vpop.permute.xlu0 %142  }
  0xa9   :  { %v149_v56 = vpop.permute.xlu1 %148   ;;  %217 = vst.msk [vmem:[%s430_s1 + $0x17] sm:$0x1] %vm7_vm0, %v143_v55  }
  0xaa   :  { %218 = vst.msk [vmem:[%s430_s1 + $0x18] sm:$0x1] %vm7_vm0, %v149_v56  }
  0xac   :  { %v155_v57 = vpop.permute.xlu0 %154  }
  0xad   :  { %v161_v58 = vpop.permute.xlu1 %160   ;;  %219 = vst.msk [vmem:[%s430_s1 + $0x19] sm:$0x1] %vm7_vm0, %v155_v57  }
  0xae   :  { %220 = vst.msk [vmem:[%s430_s1 + $0x1a] sm:$0x1] %vm7_vm0, %v161_v58  }
  0xb0   :  { %v167_v59 = vpop.permute.xlu0 %166  }
  0xb1   :  { %v173_v60 = vpop.permute.xlu1 %172   ;;  %221 = vst.msk [vmem:[%s430_s1 + $0x1b] sm:$0x1] %vm7_vm0, %v167_v59  }
  0xb2   :  { %222 = vst.msk [vmem:[%s430_s1 + $0x1c] sm:$0x1] %vm7_vm0, %v173_v60  }
  0xb4   :  { %v179_v61 = vpop.permute.xlu0 %178  }
  0xb5   :  { %v185_v62 = vpop.permute.xlu1 %184   ;;  %223 = vst.msk [vmem:[%s430_s1 + $0x1d] sm:$0x1] %vm7_vm0, %v179_v61  }
  0xb6   :  { %224 = vst.msk [vmem:[%s430_s1 + $0x1e] sm:$0x1] %vm7_vm0, %v185_v62  }
  0xb8   :  { %v191_v63 = vpop.permute.xlu0 %190  }
  0xb9   :  { %225 = vst.msk [vmem:[%s430_s1 + $0x1f] sm:$0x1] %vm7_vm0, %v191_v63  }

// kernel: tile.33
= control target key start
LH: loop header
LB: loop body
LE: loop exit
PB: predicated region body
PF: predicated region fallthrough
CT: control target
= control target key end

     0   :  { %s40_s0 = inlined_call_operand.vmem [shape: f32[4], index: 0, kind: input, shape index: {}]   ;;  %s41_s1 = inlined_call_operand.vmem [shape: f32[32,4], index: 1, kind: output, shape index: {}]  }
   0x1   :  { %v4_v0 = vld [vmem:[%s40_s0] ss:$0 sm:$0xff] }
   0x2   :  { %5 = vst [vmem:[%s41_s1] sm:$0xff] %v4_v0  ;;  %12 = vst [vmem:[%s41_s1 + $0x8] sm:$0xff] %v4_v0 }
   0x3   :  { %13 = vst [vmem:[%s41_s1 + $0x10] sm:$0xff] %v4_v0  ;;  %14 = vst [vmem:[%s41_s1 + $0x18] sm:$0xff] %v4_v0 }

// kernel: tile.34
= control target key start
LH: loop header
LB: loop body
LE: loop exit
PB: predicated region body
PF: predicated region fallthrough
CT: control target
= control target key end

     0   :  { %s259_s10 = smov 124   ;;  %s260_s11 = smov 116   ;;  %vm3_vm0 = vcmask 31744   ;;  %vm9_vm1 = vcmask 1048544   ;;  %vm15_vm2 = vcmask 1015744   ;;  %vm21_vm3 = vcmask 982944   ;;  %s399_s0 = inlined_call_operand.vmem [shape: f32[32,4], index: 0, kind: input, shape index: {}]   ;;  %s400_s1 = inlined_call_operand.vmem [shape: f32[1,128], index: 1, kind: output, shape index: {}]  }
   0x1   :  { %v197_v0 = vld [vmem:[%s399_s0 + $0x1f] sm:$0x1]   ;;  %v199_v1 = vld [vmem:[%s399_s0 + $0x1d] sm:$0x1]   ;;  %v198_v2 = vld [vmem:[%s399_s0 + $0x1e] sm:$0x1]  }
   0x2   :  { %7 = vrot.lane.b32.xlu0 %v197_v0, %s259_s10  ;;  %19 = vrot.lane.b32.xlu1 %v199_v1, %s260_s11  ;;  %v200_v3 = vld [vmem:[%s399_s0 + $0x1c] sm:$0x1]   ;;  %s261_s16 = smov 120   ;;  %s262_s17 = smov 112   ;;  %v201_v4 = vld [vmem:[%s399_s0 + $0x1b] sm:$0x1]  }
   0x3   :  { %v202_v5 = vld [vmem:[%s399_s0 + $0x1a] sm:$0x1]   ;;  %s263_s22 = smov 108   ;;  %s264_s23 = smov 104   ;;  %v203_v6 = vld [vmem:[%s399_s0 + $0x19] sm:$0x1]  }
   0x4   :  { %v204_v7 = vld [vmem:[%s399_s0 + $0x18] sm:$0x1]   ;;  %s265_s28 = smov 100   ;;  %s266_s29 = smov 96   ;;  %v205_v8 = vld [vmem:[%s399_s0 + $0x17] sm:$0x1]  }
   0x5   :  { %v206_v9 = vld [vmem:[%s399_s0 + $0x16] sm:$0x1]   ;;  %v2_v10 = vld [vmem:[%s399_s0] sm:$0x1]   ;;  %s267_s7 = smov 92   ;;  %s268_s8 = smov 88  }
   0x6   :  { %13 = vrot.lane.b32.xlu0 %v198_v2, %s261_s16  ;;  %25 = vrot.lane.b32.xlu1 %v200_v3, %s262_s17  ;;  %4 = vst.msk [vmem:[#allocation0] sm:$0x1] %vm3_vm0, %v2_v10   ;;  %v207_v11 = vld [vmem:[%s399_s0 + $0x15] sm:$0x1]   ;;  %v208_v12 = vld [vmem:[%s399_s0 + $0x14] sm:$0x1]  }
   0x7   :  { %s269_s13 = smov 84   ;;  %s270_s14 = smov 80   ;;  %v209_v13 = vld [vmem:[%s399_s0 + $0x13] sm:$0x1]   ;;  %v210_v14 = vld [vmem:[%s399_s0 + $0x12] sm:$0x1]  }
   0x8   :  { %s271_s19 = smov 76   ;;  %s272_s20 = smov 72   ;;  %v211_v15 = vld [vmem:[%s399_s0 + $0x11] sm:$0x1]   ;;  %v212_v16 = vld [vmem:[%s399_s0 + $0x10] sm:$0x1]  }
   0x9   :  { %s273_s25 = smov 68   ;;  %s274_s26 = smov 64   ;;  %v213_v17 = vld [vmem:[%s399_s0 + $0xf] sm:$0x1]   ;;  %v214_v18 = vld [vmem:[%s399_s0 + $0xe] sm:$0x1]  }
   0xa   :  { %31 = vrot.lane.b32.xlu0 %v201_v4, %s263_s22  ;;  %37 = vrot.lane.b32.xlu1 %v202_v5, %s264_s23  ;;  %s275_s2 = smov 60   ;;  %s276_s3 = smov 56   ;;  %v215_v19 = vld [vmem:[%s399_s0 + $0xd] sm:$0x1]   ;;  %v216_v20 = vld [vmem:[%s399_s0 + $0xc] sm:$0x1]  }
   0xb   :  { %s278_s9 = smov 48   ;;  %v217_v21 = vld [vmem:[%s399_s0 + $0xb] sm:$0x1]   ;;  %v218_v22 = vld [vmem:[%s399_s0 + $0xa] sm:$0x1]   ;;  %s280_s15 = smov 40  }
   0xc   :  { %v219_v23 = vld [vmem:[%s399_s0 + $0x9] sm:$0x1]   ;;  %v220_v24 = vld [vmem:[%s399_s0 + $0x8] sm:$0x1]   ;;  %s282_s21 = smov 32   ;;  %s284_s27 = smov 24  }
   0xd   :  { %v221_v25 = vld [vmem:[%s399_s0 + $0x7] sm:$0x1]   ;;  %v222_v26 = vld [vmem:[%s399_s0 + $0x6] sm:$0x1]   ;;  %v223_v27 = vld [vmem:[%s399_s0 + $0x5] sm:$0x1]  }
   0xe   :  { %43 = vrot.lane.b32.xlu0 %v203_v6, %s265_s28  ;;  %49 = vrot.lane.b32.xlu1 %v204_v7, %s266_s29  ;;  %v224_v28 = vld [vmem:[%s399_s0 + $0x4] sm:$0x1]   ;;  %s286_s4 = smov 16   ;;  %v225_v29 = vld [vmem:[%s399_s0 + $0x3] sm:$0x1]   ;;  %s288_s10 = smov 8  }
   0xf   :  { %v226_v30 = vld [vmem:[%s399_s0 + $0x2] sm:$0x1]   ;;  %v227_v31 = vld [vmem:[%s399_s0 + $0x1] sm:$0x1]   ;;  %s289_s0 = smov 4   ;;  %vm27_vm4 = vcmask 950144  }
  0x10   :  { %vm33_vm5 = vcmask 917344   ;;  %vm39_vm6 = vcmask 884544   ;;  %vm45_vm7 = vcmask 851744   ;;  %vm51_vm8 = vcmask 818944  }
  0x11   :  { %vm57_vm9 = vcmask 786144   ;;  %vm63_vm10 = vcmask 753344   ;;  %vm69_vm11 = vcmask 720544   ;;  %vm75_vm12 = vcmask 687744  }
  0x12   :  { %55 = vrot.lane.b32.xlu0 %v205_v8, %s267_s7  ;;  %61 = vrot.lane.b32.xlu1 %v206_v9, %s268_s8  ;;  %s277_s8 = smov 52   ;;  %vm81_vm13 = vcmask 654944   ;;  %vm87_vm14 = vcmask 622144   ;;  %vm93_vm15 = vcmask 589344   ;;  %vm99_vm0 = vcmask 556544  }
  0x16   :  { %67 = vrot.lane.b32.xlu0 %v207_v11, %s269_s13  ;;  %73 = vrot.lane.b32.xlu1 %v208_v12, %s270_s14  ;;  %s279_s14 = smov 44  }
  0x1a   :  { %79 = vrot.lane.b32.xlu0 %v209_v13, %s271_s19  ;;  %85 = vrot.lane.b32.xlu1 %v210_v14, %s272_s20  ;;  %s281_s20 = smov 36  }
  0x1e   :  { %91 = vrot.lane.b32.xlu0 %v211_v15, %s273_s25  ;;  %97 = vrot.lane.b32.xlu1 %v212_v16, %s274_s26  ;;  %s283_s26 = smov 28  }
  0x22   :  { %103 = vrot.lane.b32.xlu0 %v213_v17, %s275_s2  ;;  %109 = vrot.lane.b32.xlu1 %v214_v18, %s276_s3  ;;  %s285_s3 = smov 20  }
  0x26   :  { %115 = vrot.lane.b32.xlu0 %v215_v19, %s277_s8  ;;  %121 = vrot.lane.b32.xlu1 %v216_v20, %s278_s9  ;;  %s287_s9 = smov 12  }
  0x2a   :  { %127 = vrot.lane.b32.xlu0 %v217_v21, %s279_s14  ;;  %133 = vrot.lane.b32.xlu1 %v218_v22, %s280_s15 }
  0x2e   :  { %139 = vrot.lane.b32.xlu0 %v219_v23, %s281_s20  ;;  %145 = vrot.lane.b32.xlu1 %v220_v24, %s282_s21 }
  0x32   :  { %151 = vrot.lane.b32.xlu0 %v221_v25, %s283_s26  ;;  %157 = vrot.lane.b32.xlu1 %v222_v26, %s284_s27 }
  0x36   :  { %163 = vrot.lane.b32.xlu0 %v223_v27, %s285_s3  ;;  %169 = vrot.lane.b32.xlu1 %v224_v28, %s286_s4 }
  0x3a   :  { %175 = vrot.lane.b32.xlu0 %v225_v29, %s287_s9  ;;  %181 = vrot.lane.b32.xlu1 %v226_v30, %s288_s10 }
  0x3e   :  { %187 = vrot.lane.b32.xlu0 %v227_v31, %s289_s0 }
  0x74   :  { %v8_v32 = vpop.permute.xlu0 %7   ;;  %v20_v33 = vpop.permute.xlu1 %19  }
  0x75   :  { %10 = vst.msk [vmem:[#allocation0] sm:$0x1] %vm9_vm1, %v8_v32   ;;  %vm105_vm1 = vcmask 523744  }
  0x78   :  { %v14_v34 = vpop.permute.xlu0 %13   ;;  %v26_v35 = vpop.permute.xlu1 %25  }
  0x79   :  { %16 = vst.msk [vmem:[#allocation0] sm:$0x1] %vm15_vm2, %v14_v34   ;;  %vm111_vm2 = vcmask 490944  }
  0x7a   :  { %22 = vst.msk [vmem:[#allocation0] sm:$0x1] %vm21_vm3, %v20_v33   ;;  %vm117_vm3 = vcmask 458144  }
  0x7b   :  { %28 = vst.msk [vmem:[#allocation0] sm:$0x1] %vm27_vm4, %v26_v35   ;;  %vm123_vm4 = vcmask 425344  }
  0x7c   :  { %v32_v36 = vpop.permute.xlu0 %31   ;;  %v38_v37 = vpop.permute.xlu1 %37  }
  0x7d   :  { %34 = vst.msk [vmem:[#allocation0] sm:$0x1] %vm33_vm5, %v32_v36   ;;  %vm129_vm5 = vcmask 392544  }
  0x7e   :  { %40 = vst.msk [vmem:[#allocation0] sm:$0x1] %vm39_vm6, %v38_v37   ;;  %vm135_vm6 = vcmask 359744  }
  0x80   :  { %v44_v38 = vpop.permute.xlu0 %43   ;;  %v50_v39 = vpop.permute.xlu1 %49  }
  0x81   :  { %46 = vst.msk [vmem:[#allocation0] sm:$0x1] %vm45_vm7, %v44_v38   ;;  %vm141_vm7 = vcmask 326944  }
  0x82   :  { %52 = vst.msk [vmem:[#allocation0] sm:$0x1] %vm51_vm8, %v50_v39   ;;  %vm147_vm8 = vcmask 294144  }
  0x84   :  { %v56_v40 = vpop.permute.xlu0 %55   ;;  %v62_v41 = vpop.permute.xlu1 %61  }
  0x85   :  { %58 = vst.msk [vmem:[#allocation0] sm:$0x1] %vm57_vm9, %v56_v40   ;;  %vm153_vm9 = vcmask 261344  }
  0x86   :  { %64 = vst.msk [vmem:[#allocation0] sm:$0x1] %vm63_vm10, %v62_v41   ;;  %vm159_vm10 = vcmask 228544  }
  0x88   :  { %v68_v42 = vpop.permute.xlu0 %67   ;;  %v74_v43 = vpop.permute.xlu1 %73  }
  0x89   :  { %70 = vst.msk [vmem:[#allocation0] sm:$0x1] %vm69_vm11, %v68_v42   ;;  %vm165_vm11 = vcmask 195744  }
  0x8a   :  { %76 = vst.msk [vmem:[#allocation0] sm:$0x1] %vm75_vm12, %v74_v43   ;;  %vm171_vm12 = vcmask 162944  }
  0x8c   :  { %v80_v44 = vpop.permute.xlu0 %79   ;;  %v86_v45 = vpop.permute.xlu1 %85  }
  0x8d   :  { %82 = vst.msk [vmem:[#allocation0] sm:$0x1] %vm81_vm13, %v80_v44   ;;  %vm177_vm13 = vcmask 130144  }
  0x8e   :  { %88 = vst.msk [vmem:[#allocation0] sm:$0x1] %vm87_vm14, %v86_v45   ;;  %vm183_vm14 = vcmask 97344  }
  0x90   :  { %v92_v46 = vpop.permute.xlu0 %91   ;;  %v98_v47 = vpop.permute.xlu1 %97  }
  0x91   :  { %94 = vst.msk [vmem:[#allocation0] sm:$0x1] %vm93_vm15, %v92_v46   ;;  %vm189_vm15 = vcmask 64544  }
  0x92   :  { %100 = vst.msk [vmem:[#allocation0] sm:$0x1] %vm99_vm0, %v98_v47  }
  0x94   :  { %v104_v48 = vpop.permute.xlu0 %103   ;;  %v110_v49 = vpop.permute.xlu1 %109  }
  0x95   :  { %106 = vst.msk [vmem:[#allocation0] sm:$0x1] %vm105_vm1, %v104_v48  }
  0x96   :  { %112 = vst.msk [vmem:[#allocation0] sm:$0x1] %vm111_vm2, %v110_v49  }
  0x98   :  { %v116_v50 = vpop.permute.xlu0 %115   ;;  %v122_v51 = vpop.permute.xlu1 %121  }
  0x99   :  { %118 = vst.msk [vmem:[#allocation0] sm:$0x1] %vm117_vm3, %v116_v50  }
  0x9a   :  { %124 = vst.msk [vmem:[#allocation0] sm:$0x1] %vm123_vm4, %v122_v51  }
  0x9c   :  { %v128_v52 = vpop.permute.xlu0 %127   ;;  %v134_v53 = vpop.permute.xlu1 %133  }
  0x9d   :  { %130 = vst.msk [vmem:[#allocation0] sm:$0x1] %vm129_vm5, %v128_v52  }
  0x9e   :  { %136 = vst.msk [vmem:[#allocation0] sm:$0x1] %vm135_vm6, %v134_v53  }
  0xa0   :  { %v140_v54 = vpop.permute.xlu0 %139   ;;  %v146_v55 = vpop.permute.xlu1 %145  }
  0xa1   :  { %142 = vst.msk [vmem:[#allocation0] sm:$0x1] %vm141_vm7, %v140_v54  }
  0xa2   :  { %148 = vst.msk [vmem:[#allocation0] sm:$0x1] %vm147_vm8, %v146_v55  }
  0xa4   :  { %v152_v56 = vpop.permute.xlu0 %151   ;;  %v158_v57 = vpop.permute.xlu1 %157  }
  0xa5   :  { %154 = vst.msk [vmem:[#allocation0] sm:$0x1] %vm153_vm9, %v152_v56  }
  0xa6   :  { %160 = vst.msk [vmem:[#allocation0] sm:$0x1] %vm159_vm10, %v158_v57  }
  0xa8   :  { %v164_v58 = vpop.permute.xlu0 %163   ;;  %v170_v59 = vpop.permute.xlu1 %169  }
  0xa9   :  { %166 = vst.msk [vmem:[#allocation0] sm:$0x1] %vm165_vm11, %v164_v58  }
  0xaa   :  { %172 = vst.msk [vmem:[#allocation0] sm:$0x1] %vm171_vm12, %v170_v59  }
  0xac   :  { %v176_v60 = vpop.permute.xlu0 %175   ;;  %v182_v61 = vpop.permute.xlu1 %181  }
  0xad   :  { %178 = vst.msk [vmem:[#allocation0] sm:$0x1] %vm177_vm13, %v176_v60  }
  0xae   :  { %184 = vst.msk [vmem:[#allocation0] sm:$0x1] %vm183_vm14, %v182_v61  }
  0xb0   :  { %v188_v62 = vpop.permute.xlu0 %187  }
  0xb1   :  { %190 = vst.msk [vmem:[#allocation0] sm:$0x1] %vm189_vm15, %v188_v62  }
  0xb8   :  { %v194_v63 = vld [vmem:[#allocation0] sm:$0x1] }
  0xb9   :  { %196 = vst [vmem:[%s400_s1] sm:$0x1] %v194_v63 }

// kernel: resblock2d_forward.3
= control target key start
LH: loop header
LB: loop body
LE: loop exit
PB: predicated region body
PF: predicated region fallthrough
CT: control target
= control target key end

     0   :  { %s225_s9 = smov 0   ;;  %s257_s0 = inlined_call_operand.vmem [shape: f32[2,8,128], index: 0, kind: input, shape index: {}]   ;;  %s258_s1 = inlined_call_operand.vmem [shape: f32[1,128], index: 1, kind: output, shape index: {0}]   ;;  %s259_s2 = inlined_call_operand.vmem [shape: f32[1,128], index: 2, kind: output, shape index: {1}]  }
   0x1 LB: > { %s184_s10 = sadd.s32 4294967295, %s207_s9   ;;  %p187_p0 = scmp.ge.s32.totalorder %s207_s9, 1  ;;  %s207_s9 = sphi %s225_s9, %s13_s9  }
   0x2   : > { %p104_p1 = scmp.lt.s32.totalorder %s207_s9, 3 }
   0x4   : > { %p105_p2 = pnand %p187_p0, %p104_p1 }
   0x5   : > { %p120_p3 = scmp.lt.s32.totalorder (!%p105_p2), %s184_s10, 1  ;;  %p189_p4 = scmp.ne.s32.totalorder (!%p105_p2), %s184_s10, 0 }
   0x6   : > { %108 = sbr.rel (%p105_p2) target bundleno = 39 (0x27), region = 24 }
   0xd   : > { %s121_s11 = scalar_select %p120_p3, %s184_s10, 1 }
   0xe   : > { %127 = sbr.rel (%p189_p4) target bundleno = 21 (0x15), region = 28  ;;  %v209_v0 = vmov (!%p189_p4), 0.0  }
   0xf   : > { %s188_s12 = sshll.u32 %s121_s11, 3  ;;  %128 = vst [vmem:[%s258_s1] sm:$0x1] (!%p189_p4), %v209_v0  ;;  %129 = vst [vmem:[%s259_s2] sm:$0x1] (!%p189_p4), %v209_v0 }
  0x10   : > { %s123_s15 = scalar_lea.vmem %s257_s0, %s188_s12 }
  0x15 PF: > { %v130_v1 = vld [vmem:[%s123_s15] sm:$0xff] }
  0x16   : > { %v132_v2 = vrot.slane %v130_v1, 4  ;;  %v141_v3 = vmul.f32 %v130_v1, %v130_v1  ;;  %v131_v12 = vld [vmem:[%s258_s1] sm:$0x1] }
  0x17   : > { %v140_v15 = vld [vmem:[%s259_s2] sm:$0x1] }
  0x18   : > { %v133_v4 = vadd.f32 %v132_v2, %v130_v1  ;;  %v142_v5 = vrot.slane %v141_v3, 4 }
  0x1a   : > { %v134_v6 = vrot.slane %v133_v4, 2  ;;  %v143_v7 = vadd.f32 %v142_v5, %v141_v3 }
  0x1c   : > { %v135_v8 = vadd.f32 %v134_v6, %v133_v4  ;;  %v144_v9 = vrot.slane %v143_v7, 2 }
  0x1e   : > { %v136_v10 = vrot.slane %v135_v8, 1  ;;  %v145_v11 = vadd.f32 %v144_v9, %v143_v7 }
  0x20   : > { %v137_v13 = vadd.f32 %v136_v10, %v135_v8  ;;  %v146_v14 = vrot.slane %v145_v11, 1 }
  0x22   : > { %v138_v16 = vadd.f32 %v137_v13, %v131_v12  ;;  %v147_v17 = vadd.f32 %v146_v14, %v145_v11 }
  0x24   : > { %139 = vst [vmem:[%s258_s1] sm:$0x1] %v138_v16  ;;  %v148_v18 = vadd.f32 %v147_v17, %v140_v15 }
  0x26   : > { %149 = vst [vmem:[%s259_s2] sm:$0x1] %v148_v18 }
  0x27 PF: > { %s13_s9 = sadd.s32 1, %s207_s9  }
  0x28   : > { %p10_p5 = scmp.ge.s32.totalorder %s13_s9, 4  }
  0x2a   :  { %12 = sbr.rel (!%p10_p5) target bundleno = 1 (0x1), region = 62 }

// kernel: resblock2d_forward.4
= control target key start
LH: loop header
LB: loop body
LE: loop exit
PB: predicated region body
PF: predicated region fallthrough
CT: control target
= control target key end

     0   :  { %s888_s24 = smov 0   ;;  %s1016_s0 = inlined_call_operand.vmem [shape: f32[2,8,128], index: 0, kind: input, shape index: {}]   ;;  %s1017_s1 = inlined_call_operand.vmem [shape: f32[1,128], index: 1, kind: input, shape index: {}]   ;;  %s1018_s2 = inlined_call_operand.vmem [shape: f32[1,128], index: 2, kind: input, shape index: {}]   ;;  %s1019_s3 = inlined_call_operand.vmem [shape: bf16[384,128], index: 3, kind: input, shape index: {}]   ;;  %s1020_s4 = inlined_call_operand.vmem [shape: f32[1,128], index: 4, kind: input, shape index: {}]   ;;  %s1021_s5 = inlined_call_operand.vmem [shape: f32[2,8,128], index: 5, kind: output, shape index: {0}]   ;;  %s1022_s6 = inlined_call_operand.vmem [shape: f32[2,1,128], index: 6, kind: output, shape index: {1}]   ;;  %s1023_s7 = inlined_call_operand.vmem [shape: f32[2,1,128], index: 7, kind: output, shape index: {2}]  }
   0x1 LB: > { %s717_s25 = sadd.s32 4294967295, %s844_s24   ;;  %p721_p0 = scmp.ge.s32.totalorder %s844_s24, 1  ;;  %s844_s24 = sphi %s888_s24, %s18_s24  }
   0x2   : > { %p241_p1 = scmp.lt.s32.totalorder %s844_s24, 3 }
   0x4   : > { %p242_p2 = pnand %p721_p0, %p241_p1 }
   0x5   : > { %v814_v0 = vld [vmem:[%s1019_s3 + $0x40] sm:$0xff] (!%p242_p2)   ;;  %v846_v2 = vmov (!%p242_p2), 0.0   ;;  %v817_v4 = vld [vmem:[%s1019_s3 + $0x48] sm:$0xff] (!%p242_p2)   ;;  %vm847_vm0 = vmmov (!%p242_p2), 0   ;;  %v820_v7 = vld [vmem:[%s1019_s3 + $0x50] sm:$0xff] (!%p242_p2)   ;;  %p277_p3 = scmp.lt.s32.totalorder (!%p242_p2), %s717_s25, 1 }
   0x6   : > { %245 = sbr.rel (%p242_p2) target bundleno = 272 (0x110), region = 40  ;;  %v815_v1 = vld [vmem:[%s1019_s3] sm:$0xff] (!%p242_p2)   ;;  %784 = vmatprep.subr.bf16.mxu1 (!%p242_p2), %v846_v2  ;;  %310 = vst [vmem:[#allocation2] sm:$0x1] (!%p242_p2), %v846_v2  ;;  %311 = vst [vmem:[#allocation2 + $0x9] sm:$0x1] (!%p242_p2), %v846_v2  ;;  %753 = vmatprep.subr.bf16.mxu0 (!%p242_p2), %v814_v0 }
   0x7   : > { %v816_v3 = vld [vmem:[%s1019_s3 + $0x80] sm:$0xff] (!%p242_p2)   ;;  %754 = vmatpush3.bf16.msra.mxu0 (!%p242_p2), %v815_v1  ;;  %800 = vmatprep.mubr.msk.bf16.mxu1 (!%p242_p2), %vm847_vm0, %v846_v2  ;;  %v818_v5 = vld [vmem:[%s1019_s3 + $0x8] sm:$0xff] (!%p242_p2)   ;;  %v821_v8 = vld [vmem:[%s1019_s3 + $0x10] sm:$0xff] (!%p242_p2)  }
   0x8   : > { %785 = vmatpush3.bf16.msra.mxu1 (!%p242_p2), %v816_v3  ;;  %755 = vmatprep.subr.bf16.mxu0 (!%p242_p2), %v817_v4  ;;  %v819_v6 = vld [vmem:[%s1019_s3 + $0x88] sm:$0xff] (!%p242_p2)   ;;  %v822_v9 = vld [vmem:[%s1019_s3 + $0x90] sm:$0xff] (!%p242_p2)   ;;  %v823_v10 = vld [vmem:[%s1019_s3 + $0x58] sm:$0xff] (!%p242_p2)  }
   0x9   : > { %786 = vmatprep.subr.bf16.mxu1 (!%p242_p2), %v846_v2  ;;  %v824_v11 = vld [vmem:[%s1019_s3 + $0x18] sm:$0xff] (!%p242_p2)   ;;  %v826_v13 = vld [vmem:[%s1019_s3 + $0x60] sm:$0xff] (!%p242_p2)   ;;  %v829_v16 = vld [vmem:[%s1019_s3 + $0x68] sm:$0xff] (!%p242_p2)  }
   0xa   : > { %v825_v12 = vld [vmem:[%s1019_s3 + $0x98] sm:$0xff] (!%p242_p2)   ;;  %v827_v14 = vld [vmem:[%s1019_s3 + $0x20] sm:$0xff] (!%p242_p2)   ;;  %v830_v17 = vld [vmem:[%s1019_s3 + $0x28] sm:$0xff] (!%p242_p2)  }
   0xb   : > { %756 = vmatpush3.bf16.msra.mxu0 (!%p242_p2), %v818_v5  ;;  %v828_v15 = vld [vmem:[%s1019_s3 + $0xa0] sm:$0xff] (!%p242_p2)   ;;  %v831_v18 = vld [vmem:[%s1019_s3 + $0xa8] sm:$0xff] (!%p242_p2)   ;;  %v832_v19 = vld [vmem:[%s1019_s3 + $0x70] sm:$0xff] (!%p242_p2)  }
   0xc   : > { %787 = vmatpush3.bf16.msra.mxu1 (!%p242_p2), %v819_v6  ;;  %757 = vmatprep.subr.bf16.mxu0 (!%p242_p2), %v820_v7  ;;  %v833_v20 = vld [vmem:[%s1019_s3 + $0x30] sm:$0xff] (!%p242_p2)   ;;  %v724_v23 = vld [vmem:[%s1017_s1] ss:$0 sm:$0xff] (!%p242_p2)  ;;  %v835_v25 = vld [vmem:[%s1019_s3 + $0x78] sm:$0xff] (!%p242_p2)  }
   0xd   : > { %788 = vmatprep.subr.bf16.mxu1 %v846_v2  ;;  %s1025_s25 = smov (!%p277_p3, %s717_s25), 1  ;;  %v834_v21 = vld [vmem:[%s1019_s3 + $0xb0] sm:$0xff]   ;;  %v725_v24 = vld [vmem:[%s1018_s2] ss:$0 sm:$0xff]  ;;  %v836_v28 = vld [vmem:[%s1019_s3 + $0x38] sm:$0xff]  }
   0xe   : > { %s722_s14 = sshll.u32 %s1025_s25, 3  ;;  %v837_v30 = vld [vmem:[%s1019_s3 + $0xb8] sm:$0xff]   ;;  %v726_v39 = vld [vmem:[%s1020_s4] ss:$0 sm:$0xff]  ;;  %s287_s27 = scalar_lea.vmem %s1022_s6, %s1025_s25 }
   0xf   : > { %758 = vmatpush3.bf16.msra.mxu0 %v821_v8  ;;  %s280_s23 = scalar_lea.vmem %s1016_s0, %s722_s14  ;;  %s284_s22 = scalar_lea.vmem %s1021_s5, %s722_s14 }
  0x10   : > { %789 = vmatpush3.bf16.msra.mxu1 %v822_v9  ;;  %759 = vmatprep.subr.bf16.mxu0 %v823_v10  ;;  %v292_v22 = vld [vmem:[%s280_s23] sm:$0xff]  ;;  %s290_s29 = scalar_lea.vmem %s1023_s7, %s1025_s25 }
  0x11   : > { %790 = vmatprep.subr.bf16.mxu1 %v846_v2  ;;  %v300_v26 = vmul.f32 %v724_v23, %v292_v22 }
  0x13   : > { %760 = vmatpush3.bf16.msra.mxu0 %v824_v11  ;;  %v308_v27 = vadd.f32 %v725_v24, %v300_v26 }
  0x14   : > { %791 = vmatpush3.bf16.msra.mxu1 %v825_v12  ;;  %761 = vmatprep.subr.bf16.mxu0 %v826_v13 }
  0x15   : > { %792 = vmatprep.subr.bf16.mxu1 %v846_v2  ;;  %v309_v29 = vmax.f32 %v308_v27, 0.0 }
  0x17   : > { %762 = vmatpush3.bf16.msra.mxu0 %v827_v14  ;;  %312 = vst [vmem:[#allocation2 + $0x1] sm:$0xff] %v309_v29  ;;  %v317_v31 = vpack.c.bf16 %v309_v29, %v309_v29 }
  0x18   : > { %793 = vmatpush3.bf16.msra.mxu1 %v828_v15  ;;  %763 = vmatprep.subr.bf16.mxu0 %v829_v16 }
  0x19   : > { %794 = vmatprep.subr.bf16.mxu1 %v846_v2  ;;  %550 = vmatprep.mubr.bf16.mxu0 %v317_v31 }
  0x1b   : > { %764 = vmatpush3.bf16.msra.mxu0 %v830_v17 }
  0x1c   : > { %795 = vmatpush3.bf16.msra.mxu1 %v831_v18  ;;  %765 = vmatprep.subr.bf16.mxu0 %v832_v19 }
  0x1d   : > { %796 = vmatprep.subr.bf16.mxu1 %v846_v2 }
  0x1e   : > { %v313_v32 = vld [vmem:[#allocation2] sm:$0xff] }
  0x1f   : > { %766 = vmatpush3.bf16.msra.mxu0 %v833_v20  ;;  %v315_v33 = vld [vmem:[#allocation2 + $0x2] sm:$0xff]  ;;  %v316_v34 = vpack.c.bf16 %v313_v32, %v313_v32 }
  0x20   : > { %797 = vmatpush3.bf16.msra.mxu1 %v834_v21  ;;  %767 = vmatprep.subr.bf16.mxu0 %v835_v25  ;;  %v318_v35 = vpack.c.bf16 %v315_v33, %v315_v33 }
  0x21   : > { %798 = vmatprep.subr.bf16.mxu1 %v846_v2 }
  0x23   : > { %768 = vmatpush3.bf16.msra.mxu0 %v836_v28 }
  0x24   : > { %799 = vmatpush3.bf16.msra.mxu1 %v837_v30 }
  0x26   : > { %551 = vmatmul.mubr.bf16.vlgmr.msra.gmra.mrb[0].mxu0 %v316_v34 }
  0x27   : > { %801 = vmatmul.mubr.bf16.vlgmr.msra.gmra.mrb[0].mxu1 %v318_v35 }
  0xf9   : > { %v769_v36 = vpop.f32.mrb[0].mxu0 }
  0xfa   : > { %v592_v37 = vpop.f32.mrb[0].mxu1  ;;  %v770_v38 = vpop.f32.mrb[1].mxu0 }
  0xfb   : > { %v802_v40 = vpop.f32.mrb[1].mxu1  ;;  %v771_v41 = vadd.f32 %v770_v38, %v769_v36  ;;  %v772_v42 = vpop.f32.mrb[2].mxu0 }
  0xfc   : > { %v595_v43 = vpop.f32.mrb[2].mxu1  ;;  %v773_v44 = vpop.f32.mrb[3].mxu0 }
  0xfd   : > { %v803_v45 = vpop.f32.mrb[3].mxu1  ;;  %v553_v46 = vadd.f32 %v771_v41, %v726_v39 }
  0xff   : > { %v593_v47 = vadd.f32 %v592_v37, %v553_v46 }
 0x101   : > { %598 = vst [vmem:[%s284_s22] sm:$0xff] %v593_v47  ;;  %v599_v48 = vrot.slane %v593_v47, 4  ;;  %v606_v49 = vmul.f32 %v593_v47, %v593_v47 }
 0x103   : > { %v600_v50 = vadd.f32 %v599_v48, %v593_v47  ;;  %v607_v51 = vrot.slane %v606_v49, 4 }
 0x105   : > { %v601_v52 = vrot.slane %v600_v50, 2  ;;  %v608_v53 = vadd.f32 %v607_v51, %v606_v49 }
 0x107   : > { %v602_v54 = vadd.f32 %v601_v52, %v600_v50  ;;  %v609_v55 = vrot.slane %v608_v53, 2 }
 0x109   : > { %v603_v56 = vrot.slane %v602_v54, 1  ;;  %v610_v57 = vadd.f32 %v609_v55, %v608_v53 }
 0x10b   : > { %v604_v58 = vadd.f32 %v603_v56, %v602_v54  ;;  %v611_v59 = vrot.slane %v610_v57, 1 }
 0x10d   : > { %605 = vst [vmem:[%s287_s27] sm:$0x1] %v604_v58  ;;  %v612_v60 = vadd.f32 %v611_v59, %v610_v57 }
 0x10f   : > { %613 = vst [vmem:[%s290_s29] sm:$0x1] %v612_v60 }
 0x110 PF: > { %s18_s24 = sadd.s32 1, %s844_s24  }
 0x111   : > { %p15_p4 = scmp.ge.s32.totalorder %s18_s24, 4  }
 0x113   :  { %17 = sbr.rel (!%p15_p4) target bundleno = 1 (0x1), region = 94 }

// kernel: resblock2d_forward.5
= control target key start
LH: loop header
LB: loop body
LE: loop exit
PB: predicated region body
PF: predicated region fallthrough
CT: control target
= control target key end

     0   :  { %s806_s21 = smov 0   ;;  %s927_s0 = inlined_call_operand.vmem [shape: f32[2,8,128], index: 0, kind: input, shape index: {}]   ;;  %s928_s1 = inlined_call_operand.vmem [shape: f32[1,128], index: 1, kind: input, shape index: {}]   ;;  %s929_s2 = inlined_call_operand.vmem [shape: f32[1,128], index: 2, kind: input, shape index: {}]   ;;  %s930_s3 = inlined_call_operand.vmem [shape: bf16[384,128], index: 3, kind: input, shape index: {}]   ;;  %s931_s4 = inlined_call_operand.vmem [shape: f32[1,128], index: 4, kind: input, shape index: {}]   ;;  %s932_s5 = inlined_call_operand.vmem [shape: f32[2,8,128], index: 5, kind: input, shape index: {}]   ;;  %s933_s6 = inlined_call_operand.vmem [shape: f32[2,8,128], index: 6, kind: output, shape index: {}]  }
   0x1 LB: > { %s639_s22 = sadd.s32 4294967295, %s767_s21   ;;  %p643_p0 = scmp.ge.s32.totalorder %s767_s21, 1  ;;  %s767_s21 = sphi %s806_s21, %s16_s21  }
   0x2   : > { %p220_p1 = scmp.lt.s32.totalorder %s767_s21, 3 }
   0x4   : > { %p221_p2 = pnand %p643_p0, %p220_p1 }
   0x5   : > { %v737_v0 = vld [vmem:[%s930_s3 + $0x40] sm:$0xff] (!%p221_p2)   ;;  %v769_v2 = vmov (!%p221_p2), 0.0   ;;  %v740_v4 = vld [vmem:[%s930_s3 + $0x48] sm:$0xff] (!%p221_p2)   ;;  %vm770_vm0 = vmmov (!%p221_p2), 0   ;;  %v743_v7 = vld [vmem:[%s930_s3 + $0x50] sm:$0xff] (!%p221_p2)   ;;  %p252_p3 = scmp.lt.s32.totalorder (!%p221_p2), %s639_s22, 1 }
   0x6   : > { %224 = sbr.rel (%p221_p2) target bundleno = 260 (0x104), region = 44  ;;  %v738_v1 = vld [vmem:[%s930_s3] sm:$0xff] (!%p221_p2)   ;;  %707 = vmatprep.subr.bf16.mxu1 (!%p221_p2), %v769_v2  ;;  %283 = vst [vmem:[#allocation2] sm:$0x1] (!%p221_p2), %v769_v2  ;;  %284 = vst [vmem:[#allocation2 + $0x9] sm:$0x1] (!%p221_p2), %v769_v2  ;;  %676 = vmatprep.subr.bf16.mxu0 (!%p221_p2), %v737_v0 }
   0x7   : > { %v739_v3 = vld [vmem:[%s930_s3 + $0x80] sm:$0xff] (!%p221_p2)   ;;  %677 = vmatpush3.bf16.msra.mxu0 (!%p221_p2), %v738_v1  ;;  %723 = vmatprep.mubr.msk.bf16.mxu1 (!%p221_p2), %vm770_vm0, %v769_v2  ;;  %v741_v5 = vld [vmem:[%s930_s3 + $0x8] sm:$0xff] (!%p221_p2)   ;;  %v744_v8 = vld [vmem:[%s930_s3 + $0x10] sm:$0xff] (!%p221_p2)  }
   0x8   : > { %708 = vmatpush3.bf16.msra.mxu1 (!%p221_p2), %v739_v3  ;;  %678 = vmatprep.subr.bf16.mxu0 (!%p221_p2), %v740_v4  ;;  %v742_v6 = vld [vmem:[%s930_s3 + $0x88] sm:$0xff] (!%p221_p2)   ;;  %v745_v9 = vld [vmem:[%s930_s3 + $0x90] sm:$0xff] (!%p221_p2)   ;;  %v746_v10 = vld [vmem:[%s930_s3 + $0x58] sm:$0xff] (!%p221_p2)  }
   0x9   : > { %709 = vmatprep.subr.bf16.mxu1 (!%p221_p2), %v769_v2  ;;  %v747_v11 = vld [vmem:[%s930_s3 + $0x18] sm:$0xff] (!%p221_p2)   ;;  %v749_v13 = vld [vmem:[%s930_s3 + $0x60] sm:$0xff] (!%p221_p2)   ;;  %v752_v16 = vld [vmem:[%s930_s3 + $0x68] sm:$0xff] (!%p221_p2)  }
   0xa   : > { %v748_v12 = vld [vmem:[%s930_s3 + $0x98] sm:$0xff] (!%p221_p2)   ;;  %v750_v14 = vld [vmem:[%s930_s3 + $0x20] sm:$0xff] (!%p221_p2)   ;;  %v753_v17 = vld [vmem:[%s930_s3 + $0x28] sm:$0xff] (!%p221_p2)  }
   0xb   : > { %679 = vmatpush3.bf16.msra.mxu0 (!%p221_p2), %v741_v5  ;;  %v751_v15 = vld [vmem:[%s930_s3 + $0xa0] sm:$0xff] (!%p221_p2)   ;;  %v754_v18 = vld [vmem:[%s930_s3 + $0xa8] sm:$0xff] (!%p221_p2)   ;;  %v755_v19 = vld [vmem:[%s930_s3 + $0x70] sm:$0xff] (!%p221_p2)  }
   0xc   : > { %710 = vmatpush3.bf16.msra.mxu1 (!%p221_p2), %v742_v6  ;;  %680 = vmatprep.subr.bf16.mxu0 (!%p221_p2), %v743_v7  ;;  %v756_v20 = vld [vmem:[%s930_s3 + $0x30] sm:$0xff] (!%p221_p2)   ;;  %v647_v23 = vld [vmem:[%s928_s1] ss:$0 sm:$0xff] (!%p221_p2)  ;;  %v758_v25 = vld [vmem:[%s930_s3 + $0x78] sm:$0xff] (!%p221_p2)  }
   0xd   : > { %711 = vmatprep.subr.bf16.mxu1 %v769_v2  ;;  %s935_s22 = smov (!%p252_p3, %s639_s22), 1  ;;  %v757_v21 = vld [vmem:[%s930_s3 + $0xb0] sm:$0xff]   ;;  %v648_v24 = vld [vmem:[%s929_s2] ss:$0 sm:$0xff]  ;;  %v759_v28 = vld [vmem:[%s930_s3 + $0x38] sm:$0xff]  }
   0xe   : > { %s874_s9 = sshll.u32 %s935_s22, 3  ;;  %v760_v30 = vld [vmem:[%s930_s3 + $0xb8] sm:$0xff]   ;;  %v649_v39 = vld [vmem:[%s931_s4] ss:$0 sm:$0xff] }
   0xf   : > { %681 = vmatpush3.bf16.msra.mxu0 %v744_v8  ;;  %s255_s22 = scalar_lea.vmem %s927_s0, %s874_s9  ;;  %s259_s15 = scalar_lea.vmem %s932_s5, %s874_s9 }
  0x10   : > { %712 = vmatpush3.bf16.msra.mxu1 %v745_v9  ;;  %682 = vmatprep.subr.bf16.mxu0 %v746_v10  ;;  %v265_v22 = vld [vmem:[%s255_s22] sm:$0xff]  ;;  %s263_s22 = scalar_lea.vmem %s933_s6, %s874_s9 }
  0x11   : > { %713 = vmatprep.subr.bf16.mxu1 %v769_v2  ;;  %v273_v26 = vmul.f32 %v647_v23, %v265_v22  ;;  %v571_v47 = vld [vmem:[%s259_s15] sm:$0xff] }
  0x13   : > { %683 = vmatpush3.bf16.msra.mxu0 %v747_v11  ;;  %v281_v27 = vadd.f32 %v648_v24, %v273_v26 }
  0x14   : > { %714 = vmatpush3.bf16.msra.mxu1 %v748_v12  ;;  %684 = vmatprep.subr.bf16.mxu0 %v749_v13 }
  0x15   : > { %715 = vmatprep.subr.bf16.mxu1 %v769_v2  ;;  %v282_v29 = vmax.f32 %v281_v27, 0.0 }
  0x17   : > { %685 = vmatpush3.bf16.msra.mxu0 %v750_v14  ;;  %285 = vst [vmem:[#allocation2 + $0x1] sm:$0xff] %v282_v29  ;;  %v290_v31 = vpack.c.bf16 %v282_v29, %v282_v29 }
  0x18   : > { %716 = vmatpush3.bf16.msra.mxu1 %v751_v15  ;;  %686 = vmatprep.subr.bf16.mxu0 %v752_v16 }
  0x19   : > { %717 = vmatprep.subr.bf16.mxu1 %v769_v2  ;;  %523 = vmatprep.mubr.bf16.mxu0 %v290_v31 }
  0x1b   : > { %687 = vmatpush3.bf16.msra.mxu0 %v753_v17 }
  0x1c   : > { %718 = vmatpush3.bf16.msra.mxu1 %v754_v18  ;;  %688 = vmatprep.subr.bf16.mxu0 %v755_v19 }
  0x1d   : > { %719 = vmatprep.subr.bf16.mxu1 %v769_v2 }
  0x1e   : > { %v286_v32 = vld [vmem:[#allocation2] sm:$0xff] }
  0x1f   : > { %689 = vmatpush3.bf16.msra.mxu0 %v756_v20  ;;  %v288_v33 = vld [vmem:[#allocation2 + $0x2] sm:$0xff]  ;;  %v289_v34 = vpack.c.bf16 %v286_v32, %v286_v32 }
  0x20   : > { %720 = vmatpush3.bf16.msra.mxu1 %v757_v21  ;;  %690 = vmatprep.subr.bf16.mxu0 %v758_v25  ;;  %v291_v35 = vpack.c.bf16 %v288_v33, %v288_v33 }
  0x21   : > { %721 = vmatprep.subr.bf16.mxu1 %v769_v2 }
  0x23   : > { %691 = vmatpush3.bf16.msra.mxu0 %v759_v28 }
  0x24   : > { %722 = vmatpush3.bf16.msra.mxu1 %v760_v30 }
  0x26   : > { %524 = vmatmul.mubr.bf16.vlgmr.msra.gmra.mrb[0].mxu0 %v289_v34 }
  0x27   : > { %724 = vmatmul.mubr.bf16.vlgmr.msra.gmra.mrb[0].mxu1 %v291_v35 }
  0xf9   : > { %v692_v36 = vpop.f32.mrb[0].mxu0 }
  0xfa   : > { %v565_v37 = vpop.f32.mrb[0].mxu1  ;;  %v693_v38 = vpop.f32.mrb[1].mxu0 }
  0xfb   : > { %v725_v40 = vpop.f32.mrb[1].mxu1  ;;  %v694_v41 = vadd.f32 %v693_v38, %v692_v36  ;;  %v695_v42 = vpop.f32.mrb[2].mxu0 }
  0xfc   : > { %v568_v43 = vpop.f32.mrb[2].mxu1  ;;  %v696_v44 = vpop.f32.mrb[3].mxu0 }
  0xfd   : > { %v726_v45 = vpop.f32.mrb[3].mxu1  ;;  %v526_v46 = vadd.f32 %v694_v41, %v649_v39 }
  0xff   : > { %v566_v48 = vadd.f32 %v565_v37, %v526_v46 }
 0x101   : > { %v572_v49 = vadd.f32 %v571_v47, %v566_v48 }
 0x103   : > { %573 = vst [vmem:[%s263_s22] sm:$0xff] %v572_v49 }
 0x104 PF: > { %s16_s21 = sadd.s32 1, %s767_s21  }
 0x105   : > { %p13_p4 = scmp.ge.s32.totalorder %s16_s21, 4  }
 0x107   :  { %15 = sbr.rel (!%p13_p4) target bundleno = 1 (0x1), region = 77 }

</bundles_post_ra>
